<compile_context>
chip_gen: v7x
topology: tpu7x:2x2x1
jax: 0.10.0
libtpu: 0.0.40
codegen_flags: <defaults>
</compile_context>

<pallas_src>
import functools
import math

import numpy as np

import jax
import jax.numpy as jnp
from jax import lax
from jax.experimental import pallas as pl
from jax.experimental.pallas import tpu as pltpu

_LN_EPS = 1e-5
_NEG_SEQ = -1e20    # value used by the reference's masked_fill
_NEG_HEAD = -1e30   # strictly dominates _NEG_SEQ -> cross-head prob is exactly 0


def _round_up(x, m):
    return ((x + m - 1) // m) * m


# ----------------------------------------------------------------------------
# Packing-order bookkeeping (the reference does a RAW reshape (L,E)->(H,L,Dh)).
# Our in-kernel packing places original element (l, e=j*Dh+d) at packed row
# r = j*L + l; its scrambled (head, position) under the reference reshape is
# derived from g = l*H + j  ->  head = g // L, pos = g % L.
# ----------------------------------------------------------------------------
def _packed_coords(L, heads):
    r = np.arange(heads * L)
    j, l = r // L, r % L
    g = l * heads + j
    return g // L, g % L                      # (head, scrambled position)


def _head_mask_np(Lq, Lk, heads):
    hq, _ = _packed_coords(Lq, heads)
    hk, _ = _packed_coords(Lk, heads)
    return np.where(hq[:, None] == hk[None, :], 0.0, _NEG_HEAD).astype(np.float32)


def _causal_mask_np(Lt, heads):
    h, p = _packed_coords(Lt, heads)
    same = h[:, None] == h[None, :]
    causal = p[:, None] >= p[None, :]
    m = np.where(causal, 0.0, _NEG_SEQ)
    return np.where(same, m, _NEG_HEAD).astype(np.float32)


# ----------------------------------------------------------------------------
# In-kernel helpers (operate on per-batch 2-D jnp arrays inside a kernel)
# ----------------------------------------------------------------------------
def _layer_norm(x, g, b, eps=_LN_EPS):
    mean = jnp.mean(x, axis=-1, keepdims=True)
    var = jnp.mean(jnp.square(x - mean), axis=-1, keepdims=True)
    return (x - mean) * lax.rsqrt(var + eps) * g + b


def _pack_heads(x, heads, head_dim):
    # (L, E) -> (H*L, Dh); row r = j*L + l holds x[l, j*Dh:(j+1)*Dh]
    pieces = [x[:, j * head_dim:(j + 1) * head_dim] for j in range(heads)]
    return jnp.concatenate(pieces, axis=0)


def _packed_attention(q_in, kv_in, w_qkv, add_mask, heads, head_dim):
    # q_in (Lq, E), kv_in (Lk, E) f32; w_qkv (Dh, 3*Dh) bf16 (Q part pre-scaled
    # by 1/sqrt(Dh)); add_mask (H*Lq, H*Lk) additive f32 (seq + cross-head).
    qp = _pack_heads(q_in, heads, head_dim).astype(jnp.bfloat16)        # (H*Lq, Dh)
    q_all = jnp.dot(qp, w_qkv, preferred_element_type=jnp.float32)      # (H*Lq, 3Dh)
    if q_in is kv_in:
        kv_all = q_all
    else:
        kvp = _pack_heads(kv_in, heads, head_dim).astype(jnp.bfloat16)  # (H*Lk, Dh)
        kv_all = jnp.dot(kvp, w_qkv, preferred_element_type=jnp.float32)
    q2 = q_all[:, :head_dim]
    k2 = kv_all[:, head_dim:2 * head_dim]
    v2 = kv_all[:, 2 * head_dim:]
    # NT contraction: (H*Lq, Dh) x (H*Lk, Dh) -> (H*Lq, H*Lk)
    s = lax.dot_general(q2.astype(jnp.bfloat16), k2.astype(jnp.bfloat16),
                        (((1,), (1,)), ((), ())),
                        preferred_element_type=jnp.float32)
    s = s + add_mask
    s = s - jnp.max(s, axis=-1, keepdims=True)
    p = jnp.exp(s)
    p = p * pl.reciprocal(jnp.sum(p, axis=-1, keepdims=True), approx=True)
    return jnp.dot(p.astype(jnp.bfloat16), v2.astype(jnp.bfloat16),
                   preferred_element_type=jnp.float32)                  # (H*Lq, Dh)


def _attn_out_proj(o_packed, wo_split, wo_b, heads, Lq):
    # Inverse raw reshape folded into the out-projection:
    #   out = raw_unreshape(o_packed) @ Wo^T + b = sum_j O_j @ Wo_rows_j + b
    acc = None
    for j in range(heads):
        part = jnp.dot(o_packed[j * Lq:(j + 1) * Lq, :].astype(jnp.bfloat16),
                       wo_split[j], preferred_element_type=jnp.float32)
        acc = part if acc is None else acc + part
    return acc + wo_b


def _ffn(x, w1, b1, w2, b2):
    h = jnp.dot(x.astype(jnp.bfloat16), w1,
                preferred_element_type=jnp.float32) + b1
    h = jnp.maximum(h, 0.0)
    return jnp.dot(h.astype(jnp.bfloat16), w2,
                   preferred_element_type=jnp.float32) + b2


# ----------------------------------------------------------------------------
# Fused kernels (one grid step per batch element)
# ----------------------------------------------------------------------------
def _encoder_block_kernel(x_ref, padcol_ref, hmask_ref, wqkv_ref, wo_ref, wob_ref,
                          g1_ref, be1_ref, w1_ref, b1_ref, w2_ref, b2_ref,
                          g2_ref, be2_ref, o_ref, *, heads, head_dim):
    x = x_ref[0]                                   # (L, E) f32
    L = x.shape[0]
    add_mask = hmask_ref[...] + padcol_ref[0]      # (H*L, H*L)
    attn = _packed_attention(x, x, wqkv_ref[...], add_mask, heads, head_dim)
    a = _attn_out_proj(attn, wo_ref[...], wob_ref[...], heads, L)
    x1 = _layer_norm(a + x, g1_ref[...], be1_ref[...])            # dropout = id
    f = _ffn(x1, w1_ref[...], b1_ref[...], w2_ref[...], b2_ref[...])
    o_ref[0] = _layer_norm(f + x1, g2_ref[...], be2_ref[...])     # dropout = id


def _decoder_block_kernel(x_ref, enc_ref, padcol_ref, cmask_ref, hmask_ref,
                          wqkv_s_ref, wo_s_ref, wob_s_ref, gn_ref, bn_ref,
                          wqkv_c_ref, wo_c_ref, wob_c_ref,
                          g1_ref, be1_ref, w1_ref, b1_ref, w2_ref, b2_ref,
                          g2_ref, be2_ref, o_ref, *, heads, head_dim):
    x = x_ref[0]                                   # (Lt, E)
    enc = enc_ref[0]                               # (Ls, E)
    Lt = x.shape[0]
    # masked (causal) self-attention
    attn = _packed_attention(x, x, wqkv_s_ref[...], cmask_ref[...],
                             heads, head_dim)
    a = _attn_out_proj(attn, wo_s_ref[...], wob_s_ref[...], heads, Lt)
    q = _layer_norm(a + x, gn_ref[...], bn_ref[...])              # dropout = id
    # cross-attention over encoder output (src pad mask)
    add_mask = hmask_ref[...] + padcol_ref[0]
    attn2 = _packed_attention(q, enc, wqkv_c_ref[...], add_mask,
                              heads, head_dim)
    a2 = _attn_out_proj(attn2, wo_c_ref[...], wob_c_ref[...], heads, Lt)
    x1 = _layer_norm(a2 + q, g1_ref[...], be1_ref[...])
    f = _ffn(x1, w1_ref[...], b1_ref[...], w2_ref[...], b2_ref[...])
    o_ref[0] = _layer_norm(f + x1, g2_ref[...], be2_ref[...])


def _fc_out_kernel(x_ref, w_ref, b_ref, o_ref):
    o_ref[0] = jnp.dot(x_ref[0].astype(jnp.bfloat16), w_ref[...],
                       preferred_element_type=jnp.float32) + b_ref[...]


# ----------------------------------------------------------------------------
# pallas_call wrappers
# ----------------------------------------------------------------------------
def _const_spec(shape):
    nd = len(shape)
    return pl.BlockSpec(shape, lambda b, _nd=nd: (0,) * _nd)


def _batch_spec(tail_shape):
    nd = len(tail_shape)
    return pl.BlockSpec((1,) + tuple(tail_shape),
                        lambda b, _nd=nd: (b,) + (0,) * _nd)


_PARALLEL_B = pltpu.CompilerParams(dimension_semantics=("parallel",))


def encoder_block_forward(lp, x, pad_col, head_mask, *, heads, head_dim):
    B, L, E = x.shape
    F = lp["ff1_w"].shape[1]
    HL = heads * L
    kern = functools.partial(_encoder_block_kernel, heads=heads,
                             head_dim=head_dim)
    at = lp["attn"]
    return pl.pallas_call(
        kern,
        out_shape=jax.ShapeDtypeStruct((B, L, E), jnp.float32),
        grid=(B,),
        in_specs=[
            _batch_spec((L, E)),                       # x
            _batch_spec((1, HL)),                      # per-batch pad column
            _const_spec((HL, HL)),                     # cross-head mask
            _const_spec((head_dim, 3 * head_dim)),     # fused QKV weight
            _const_spec((heads, head_dim, E)),         # out-proj (split by head)
            _const_spec((1, E)),                       # out-proj bias
            _const_spec((1, E)), _const_spec((1, E)),  # LN1
            _const_spec((E, F)), _const_spec((1, F)),  # FF1
            _const_spec((F, E)), _const_spec((1, E)),  # FF2
            _const_spec((1, E)), _const_spec((1, E)),  # LN2
        ],
        out_specs=_batch_spec((L, E)),
        compiler_params=_PARALLEL_B,
    )(x, pad_col, head_mask,
      at["wqkv_h"], at["wo_split"], at["wo_b"],
      lp["norm1_g"], lp["norm1_b"],
      lp["ff1_w"], lp["ff1_b"], lp["ff2_w"], lp["ff2_b"],
      lp["norm2_g"], lp["norm2_b"])


def decoder_block_forward(lp, x, enc, pad_col, causal_mask, head_mask_cross, *,
                          heads, head_dim):
    B, Lt, E = x.shape
    Ls = enc.shape[1]
    tb = lp["tblock"]
    F = tb["ff1_w"].shape[1]
    HLt, HLs = heads * Lt, heads * Ls
    kern = functools.partial(_decoder_block_kernel, heads=heads,
                             head_dim=head_dim)
    sa, ca = lp["self_attn"], tb["attn"]
    return pl.pallas_call(
        kern,
        out_shape=jax.ShapeDtypeStruct((B, Lt, E), jnp.float32),
        grid=(B,),
        in_specs=[
            _batch_spec((Lt, E)),                      # x
            _batch_spec((Ls, E)),                      # enc_out
            _batch_spec((1, HLs)),                     # per-batch pad column
            _const_spec((HLt, HLt)),                   # causal (+ head) mask
            _const_spec((HLt, HLs)),                   # cross-head mask
            _const_spec((head_dim, 3 * head_dim)),     # self-attn QKV
            _const_spec((heads, head_dim, E)),         # self-attn out-proj
            _const_spec((1, E)),                       # self-attn out bias
            _const_spec((1, E)), _const_spec((1, E)),  # decoder-block LN
            _const_spec((head_dim, 3 * head_dim)),     # cross-attn QKV
            _const_spec((heads, head_dim, E)),         # cross-attn out-proj
            _const_spec((1, E)),                       # cross-attn out bias
            _const_spec((1, E)), _const_spec((1, E)),  # LN1
            _const_spec((E, F)), _const_spec((1, F)),  # FF1
            _const_spec((F, E)), _const_spec((1, E)),  # FF2
            _const_spec((1, E)), _const_spec((1, E)),  # LN2
        ],
        out_specs=_batch_spec((Lt, E)),
        compiler_params=_PARALLEL_B,
    )(x, enc, pad_col, causal_mask, head_mask_cross,
      sa["wqkv_h"], sa["wo_split"], sa["wo_b"],
      lp["norm_g"], lp["norm_b"],
      ca["wqkv_h"], ca["wo_split"], ca["wo_b"],
      tb["norm1_g"], tb["norm1_b"],
      tb["ff1_w"], tb["ff1_b"], tb["ff2_w"], tb["ff2_b"],
      tb["norm2_g"], tb["norm2_b"])


def fc_out_forward(x, w_pad, b_pad, out_dim):
    B, L, E = x.shape
    Vp = w_pad.shape[1]
    y = pl.pallas_call(
        _fc_out_kernel,
        out_shape=jax.ShapeDtypeStruct((B, L, Vp), jnp.float32),
        grid=(B,),
        in_specs=[_batch_spec((L, E)), _const_spec((E, Vp)),
                  _const_spec((1, Vp))],
        out_specs=_batch_spec((L, Vp)),
        compiler_params=_PARALLEL_B,
    )(x, w_pad, b_pad)
    return y[:, :, :out_dim]


# ----------------------------------------------------------------------------
# Full forward pass
# ----------------------------------------------------------------------------
def transformer_scratch_forward(params, src, trg, *, heads, src_pad_idx,
                                trg_vocab):
    B, Ls = src.shape
    _, Lt = trg.shape
    enc_p, dec_p = params["encoder"], params["decoder"]
    E = enc_p["emb_table"].shape[1]
    head_dim = E // heads

    # Constant masks are built with numpy at trace time (compile-time consts);
    # only the per-batch src-pad column vector is runtime data.
    _, pos_ks = _packed_coords(Ls, heads)
    head_mask_enc = jnp.asarray(_head_mask_np(Ls, Ls, heads))
    head_mask_cross = jnp.asarray(_head_mask_np(Lt, Ls, heads))
    causal_mask = jnp.asarray(_causal_mask_np(Lt, heads))
    pad_ok = (src != src_pad_idx)
    pad_col = jnp.where(pad_ok[:, pos_ks], 0.0, _NEG_SEQ).astype(jnp.float32)
    pad_col = pad_col[:, None, :]                               # (B, 1, H*Ls)

    # encoder (embedding gather + positional add stay in plain JAX)
    out = jnp.take(enc_p["emb_table"], src, axis=0) + enc_p["pos_emb"][:Ls]
    for lp in enc_p["layers"]:
        out = encoder_block_forward(lp, out, pad_col, head_mask_enc,
                                    heads=heads, head_dim=head_dim)
    enc_out = out

    # decoder
    out = jnp.take(dec_p["emb_table"], trg, axis=0) + dec_p["pos_emb"][:Lt]
    for lp in dec_p["layers"]:
        out = decoder_block_forward(lp, out, enc_out, pad_col, causal_mask,
                                    head_mask_cross, heads=heads,
                                    head_dim=head_dim)
    return fc_out_forward(out, dec_p["fc_out_w"], dec_p["fc_out_b"], trg_vocab)


# ----------------------------------------------------------------------------
# Deterministic parameter construction (weights pre-arranged / pre-cast once)
# ----------------------------------------------------------------------------
def _init_linear(key, in_f, out_f):
    k1, k2 = jax.random.split(key)
    w = jax.random.normal(k1, (out_f, in_f), jnp.float32) / math.sqrt(in_f)
    b = jax.random.normal(k2, (out_f,), jnp.float32) * 0.02
    return w.T, b.reshape(1, out_f)         # stored transposed for x @ w_t


def _init_mha(key, emb_size, heads):
    Dh = emb_size // heads
    ks = jax.random.split(key, 5)
    sc = 1.0 / math.sqrt(Dh)
    wq = jax.random.normal(ks[0], (Dh, Dh), jnp.float32) * sc
    wk = jax.random.normal(ks[1], (Dh, Dh), jnp.float32) * sc
    wv = jax.random.normal(ks[2], (Dh, Dh), jnp.float32) * sc
    wo_t, wo_b = _init_linear(ks[3], emb_size, emb_size)
    inv_scale = 1.0 / math.sqrt(Dh)          # reference: softmax(energy/sqrt(Dh))
    wqkv_h = jnp.concatenate([wq.T * inv_scale, wk.T, wv.T],
                             axis=1).astype(jnp.bfloat16)        # (Dh, 3Dh)
    wo_split = wo_t.reshape(heads, Dh, emb_size).astype(jnp.bfloat16)
    return {"wqkv_h": wqkv_h, "wo_split": wo_split, "wo_b": wo_b}


def _init_tblock(key, emb_size, heads, fexp):
    ks = jax.random.split(key, 3)
    F = fexp * emb_size
    w1, b1 = _init_linear(ks[1], emb_size, F)
    w2, b2 = _init_linear(ks[2], F, emb_size)
    return {"attn": _init_mha(ks[0], emb_size, heads),
            "norm1_g": jnp.ones((1, emb_size), jnp.float32),
            "norm1_b": jnp.zeros((1, emb_size), jnp.float32),
            "norm2_g": jnp.ones((1, emb_size), jnp.float32),
            "norm2_b": jnp.zeros((1, emb_size), jnp.float32),
            "ff1_w": w1.astype(jnp.bfloat16), "ff1_b": b1,
            "ff2_w": w2.astype(jnp.bfloat16), "ff2_b": b2}


def _init_dblock(key, emb_size, heads, fexp):
    ks = jax.random.split(key, 2)
    return {"self_attn": _init_mha(ks[0], emb_size, heads),
            "norm_g": jnp.ones((1, emb_size), jnp.float32),
            "norm_b": jnp.zeros((1, emb_size), jnp.float32),
            "tblock": _init_tblock(ks[1], emb_size, heads, fexp)}


def _make_pos_emb(max_seq_len, emb_size):
    position = jnp.arange(max_seq_len, dtype=jnp.float32)[:, None]
    div_term = jnp.exp(jnp.arange(0, emb_size, 2, dtype=jnp.float32)
                       * (-math.log(10000.0) / emb_size))
    pe = jnp.zeros((max_seq_len, emb_size), jnp.float32)
    pe = pe.at[:, 0::2].set(jnp.sin(position * div_term))
    pe = pe.at[:, 1::2].set(jnp.cos(position * div_term))
    return pe


def init_transformer_params(key, inp_vocab, trg_vocab, emb_size, n_layers,
                            heads, fexp, max_seq_len):
    ks = jax.random.split(key, 5)
    enc_layers = [_init_tblock(k, emb_size, heads, fexp)
                  for k in jax.random.split(ks[0], n_layers)]
    dec_layers = [_init_dblock(k, emb_size, heads, fexp)
                  for k in jax.random.split(ks[1], n_layers)]
    enc_emb = jax.random.normal(ks[2], (inp_vocab, emb_size), jnp.float32) * 0.1
    dec_emb = jax.random.normal(ks[3], (trg_vocab, emb_size), jnp.float32) * 0.1
    fc_w, fc_b = _init_linear(ks[4], emb_size, trg_vocab)
    vpad = _round_up(trg_vocab, 128)                 # lane-dense, padded once
    fc_w = jnp.pad(fc_w, ((0, 0), (0, vpad - trg_vocab))).astype(jnp.bfloat16)
    fc_b = jnp.pad(fc_b, ((0, 0), (0, vpad - trg_vocab)))
    pos_emb = _make_pos_emb(max_seq_len, emb_size)
    return {
        "encoder": {"emb_table": enc_emb, "pos_emb": pos_emb,
                    "layers": enc_layers},
        "decoder": {"emb_table": dec_emb, "pos_emb": pos_emb,
                    "layers": dec_layers,
                    "fc_out_w": fc_w, "fc_out_b": fc_b},
    }


# ----------------------------------------------------------------------------
# Main
# ----------------------------------------------------------------------------
if __name__ == "__main__":
    INP_VOCAB = 50
    TRG_VOCAB = 60
    SRC_PAD = 0
    EMB = 32
    N_LAYERS = 2
    HEADS = 4
    FEXP = 2
    MAX_SEQ = 16
    B = 2
    LS = 8   # source seq len
    LT = 8   # target seq len

    root = jax.random.PRNGKey(0)
    kp, ks, kt = jax.random.split(root, 3)

    params = init_transformer_params(kp, INP_VOCAB, TRG_VOCAB, EMB,
                                     N_LAYERS, HEADS, FEXP, MAX_SEQ)

    src = jax.random.randint(ks, (B, LS), 1, INP_VOCAB, dtype=jnp.int32)
    src = src.at[:, -2:].set(SRC_PAD)   # some padding so src_mask matters
    trg = jax.random.randint(kt, (B, LT), 1, TRG_VOCAB, dtype=jnp.int32)

    fwd = jax.jit(functools.partial(transformer_scratch_forward,
                                    heads=HEADS, src_pad_idx=SRC_PAD,
                                    trg_vocab=TRG_VOCAB))
    out = jax.block_until_ready(fwd(params, src, trg))

    assert out.shape == (B, LT, TRG_VOCAB), out.shape
    assert bool(jnp.all(jnp.isfinite(out)))
    print("KERNEL_OK")
</pallas_src>

<mosaic_0001>
module attributes {stable_mosaic.version = 11 : i64} {
  func.func @_fc_out_kernel(%arg0: i32, %arg1: memref<1x8x32xf32, #tpu.memory_space<vmem>>, %arg2: memref<32x128xbf16, #tpu.memory_space<vmem>>, %arg3: memref<1x128xf32, #tpu.memory_space<vmem>>, %arg4: memref<1x8x128xf32, #tpu.memory_space<vmem>>) attributes {dimension_semantics = [#tpu.dimension_semantics<parallel>], iteration_bounds = array<i64: 2>, scalar_prefetch = 0 : i64, scratch_operands = 0 : i64, tpu.core_type = #tpu.core_type<tc>, window_params = [{transform_indices = @transform_0, window_bounds = array<i64: 1, 8, 32>}, {pipeline_mode = #tpu.pipeline_mode<synchronous>, transform_indices = @transform_1, window_bounds = array<i64: 32, 128>}, {pipeline_mode = #tpu.pipeline_mode<synchronous>, transform_indices = @transform_2, window_bounds = array<i64: 1, 128>}, {transform_indices = @transform_3, window_bounds = array<i64: 1, 8, 128>}]} {
    %c0 = arith.constant 0 : index
    %c0_0 = arith.constant 0 : index
    %c0_1 = arith.constant 0 : index
    %0 = vector.load %arg1[%c0, %c0_0, %c0_1] : memref<1x8x32xf32, #tpu.memory_space<vmem>>, vector<1x8x32xf32>
    %1 = vector.shape_cast %0 : vector<1x8x32xf32> to vector<8x32xf32>
    %2 = arith.truncf %1 : vector<8x32xf32> to vector<8x32xbf16>
    %c0_2 = arith.constant 0 : index
    %c0_3 = arith.constant 0 : index
    %3 = vector.load %arg2[%c0_2, %c0_3] : memref<32x128xbf16, #tpu.memory_space<vmem>>, vector<32x128xbf16>
    %cst = arith.constant dense<0.000000e+00> : vector<8x128xf32>
    %4 = tpu.matmul %2, %3, %cst {dimension_numbers = #tpu.dot_dimension_numbers<[1], [0], [0], [1], [0, 0, 1, 1], [], []>} : vector<8x32xbf16>, vector<32x128xbf16>, vector<8x128xf32> -> vector<8x128xf32>
    %c0_4 = arith.constant 0 : index
    %c0_5 = arith.constant 0 : index
    %5 = vector.load %arg3[%c0_4, %c0_5] : memref<1x128xf32, #tpu.memory_space<vmem>>, vector<1x128xf32>
    %6 = vector.broadcast %5 : vector<1x128xf32> to vector<8x128xf32>
    %7 = arith.addf %4, %6 : vector<8x128xf32>
    %c0_6 = arith.constant 0 : index
    %c0_7 = arith.constant 0 : index
    %c0_8 = arith.constant 0 : index
    %8 = vector.load %arg4[%c0_6, %c0_7, %c0_8] : memref<1x8x128xf32, #tpu.memory_space<vmem>>, vector<1x8x128xf32>
    %9 = vector.shape_cast %8 : vector<1x8x128xf32> to vector<8x128xf32>
    %10 = vector.shape_cast %7 : vector<8x128xf32> to vector<1x8x128xf32>
    tpu.vector_store %arg4[%c0_6, %c0_7, %c0_8], %10 {strides = array<i32>} : memref<1x8x128xf32, #tpu.memory_space<vmem>>, vector<1x8x128xf32>,
    return
  }
  func.func @transform_0(%arg0: i32) -> (i32, i32, i32) {
    %c0_i32 = arith.constant 0 : i32
    %c0_i32_0 = arith.constant 0 : i32
    %c0_i32_1 = arith.constant 0 : i32
    return %arg0, %c0_i32, %c0_i32_0 : i32, i32, i32
  }
  func.func @transform_1(%arg0: i32) -> (i32, i32) {
    %c0_i32 = arith.constant 0 : i32
    %c0_i32_0 = arith.constant 0 : i32
    %c0_i32_1 = arith.constant 0 : i32
    return %c0_i32, %c0_i32_0 : i32, i32
  }
  func.func @transform_2(%arg0: i32) -> (i32, i32) {
    %c0_i32 = arith.constant 0 : i32
    %c0_i32_0 = arith.constant 0 : i32
    %c0_i32_1 = arith.constant 0 : i32
    return %c0_i32, %c0_i32_0 : i32, i32
  }
  func.func @transform_3(%arg0: i32) -> (i32, i32, i32) {
    %c0_i32 = arith.constant 0 : i32
    %c0_i32_0 = arith.constant 0 : i32
    %c0_i32_1 = arith.constant 0 : i32
    return %arg0, %c0_i32, %c0_i32_0 : i32, i32, i32
  }
}

module attributes {stable_mosaic.version = 11 : i64} {
  func.func @_encoder_block_kernel(%arg0: i32, %arg1: memref<1x8x32xf32, #tpu.memory_space<vmem>>, %arg2: memref<1x1x32xf32, #tpu.memory_space<vmem>>, %arg3: memref<32x32xf32, #tpu.memory_space<vmem>>, %arg4: memref<8x24xbf16, #tpu.memory_space<vmem>>, %arg5: memref<4x8x32xbf16, #tpu.memory_space<vmem>>, %arg6: memref<1x32xf32, #tpu.memory_space<vmem>>, %arg7: memref<1x32xf32, #tpu.memory_space<vmem>>, %arg8: memref<1x32xf32, #tpu.memory_space<vmem>>, %arg9: memref<32x64xbf16, #tpu.memory_space<vmem>>, %arg10: memref<1x64xf32, #tpu.memory_space<vmem>>, %arg11: memref<64x32xbf16, #tpu.memory_space<vmem>>, %arg12: memref<1x32xf32, #tpu.memory_space<vmem>>, %arg13: memref<1x32xf32, #tpu.memory_space<vmem>>, %arg14: memref<1x32xf32, #tpu.memory_space<vmem>>, %arg15: memref<1x8x32xf32, #tpu.memory_space<vmem>>) attributes {dimension_semantics = [#tpu.dimension_semantics<parallel>], iteration_bounds = array<i64: 2>, scalar_prefetch = 0 : i64, scratch_operands = 0 : i64, tpu.core_type = #tpu.core_type<tc>, window_params = [{transform_indices = @transform_0, window_bounds = array<i64: 1, 8, 32>}, {transform_indices = @transform_1, window_bounds = array<i64: 1, 1, 32>}, {pipeline_mode = #tpu.pipeline_mode<synchronous>, transform_indices = @transform_2, window_bounds = array<i64: 32, 32>}, {pipeline_mode = #tpu.pipeline_mode<synchronous>, transform_indices = @transform_3, window_bounds = array<i64: 8, 24>}, {pipeline_mode = #tpu.pipeline_mode<synchronous>, transform_indices = @transform_4, window_bounds = array<i64: 4, 8, 32>}, {pipeline_mode = #tpu.pipeline_mode<synchronous>, transform_indices = @transform_5, window_bounds = array<i64: 1, 32>}, {pipeline_mode = #tpu.pipeline_mode<synchronous>, transform_indices = @transform_6, window_bounds = array<i64: 1, 32>}, {pipeline_mode = #tpu.pipeline_mode<synchronous>, transform_indices = @transform_7, window_bounds = array<i64: 1, 32>}, {pipeline_mode = #tpu.pipeline_mode<synchronous>, transform_indices = @transform_8, window_bounds = array<i64: 32, 64>}, {pipeline_mode = #tpu.pipeline_mode<synchronous>, transform_indices = @transform_9, window_bounds = array<i64: 1, 64>}, {pipeline_mode = #tpu.pipeline_mode<synchronous>, transform_indices = @transform_10, window_bounds = array<i64: 64, 32>}, {pipeline_mode = #tpu.pipeline_mode<synchronous>, transform_indices = @transform_11, window_bounds = array<i64: 1, 32>}, {pipeline_mode = #tpu.pipeline_mode<synchronous>, transform_indices = @transform_12, window_bounds = array<i64: 1, 32>}, {pipeline_mode = #tpu.pipeline_mode<synchronous>, transform_indices = @transform_13, window_bounds = array<i64: 1, 32>}, {transform_indices = @transform_14, window_bounds = array<i64: 1, 8, 32>}]} {
    %c0 = arith.constant 0 : index
    %c0_0 = arith.constant 0 : index
    %c0_1 = arith.constant 0 : index
    %0 = vector.load %arg1[%c0, %c0_0, %c0_1] : memref<1x8x32xf32, #tpu.memory_space<vmem>>, vector<1x8x32xf32>
    %1 = vector.shape_cast %0 : vector<1x8x32xf32> to vector<8x32xf32>
    %c0_2 = arith.constant 0 : index
    %c0_3 = arith.constant 0 : index
    %2 = vector.load %arg3[%c0_2, %c0_3] : memref<32x32xf32, #tpu.memory_space<vmem>>, vector<32x32xf32>
    %c0_4 = arith.constant 0 : index
    %c0_5 = arith.constant 0 : index
    %c0_6 = arith.constant 0 : index
    %3 = vector.load %arg2[%c0_4, %c0_5, %c0_6] : memref<1x1x32xf32, #tpu.memory_space<vmem>>, vector<1x1x32xf32>
    %4 = vector.shape_cast %3 : vector<1x1x32xf32> to vector<1x32xf32>
    %5 = vector.broadcast %4 : vector<1x32xf32> to vector<32x32xf32>
    %6 = arith.addf %2, %5 : vector<32x32xf32>
    %c0_7 = arith.constant 0 : index
    %c0_8 = arith.constant 0 : index
    %7 = vector.load %arg4[%c0_7, %c0_8] : memref<8x24xbf16, #tpu.memory_space<vmem>>, vector<8x24xbf16>
    %8 = vector.extract_strided_slice %1 {offsets = [0, 0], sizes = [8, 8], strides = [1, 1]} : vector<8x32xf32> to vector<8x8xf32>
    %9 = vector.extract_strided_slice %1 {offsets = [0, 8], sizes = [8, 8], strides = [1, 1]} : vector<8x32xf32> to vector<8x8xf32>
    %10 = vector.extract_strided_slice %1 {offsets = [0, 16], sizes = [8, 8], strides = [1, 1]} : vector<8x32xf32> to vector<8x8xf32>
    %11 = vector.extract_strided_slice %1 {offsets = [0, 24], sizes = [8, 8], strides = [1, 1]} : vector<8x32xf32> to vector<8x8xf32>
    %12 = tpu.concatenate %8, %9, %10, %11 in 0 : vector<8x8xf32>, vector<8x8xf32>, vector<8x8xf32>, vector<8x8xf32> -> vector<32x8xf32>
    %13 = arith.truncf %12 : vector<32x8xf32> to vector<32x8xbf16>
    %cst = arith.constant dense<0.000000e+00> : vector<32x24xf32>
    %14 = tpu.matmul %13, %7, %cst {dimension_numbers = #tpu.dot_dimension_numbers<[1], [0], [0], [1], [0, 0, 1, 1], [], []>} : vector<32x8xbf16>, vector<8x24xbf16>, vector<32x24xf32> -> vector<32x24xf32>
    %15 = vector.extract_strided_slice %14 {offsets = [0, 0], sizes = [32, 8], strides = [1, 1]} : vector<32x24xf32> to vector<32x8xf32>
    %16 = vector.extract_strided_slice %14 {offsets = [0, 8], sizes = [32, 8], strides = [1, 1]} : vector<32x24xf32> to vector<32x8xf32>
    %17 = vector.extract_strided_slice %14 {offsets = [0, 16], sizes = [32, 8], strides = [1, 1]} : vector<32x24xf32> to vector<32x8xf32>
    %18 = arith.truncf %15 : vector<32x8xf32> to vector<32x8xbf16>
    %19 = arith.truncf %16 : vector<32x8xf32> to vector<32x8xbf16>
    %cst_9 = arith.constant dense<0.000000e+00> : vector<32x32xf32>
    %20 = tpu.matmul %18, %19, %cst_9 {dimension_numbers = #tpu.dot_dimension_numbers<[1], [1], [0], [0], [0, 0, 1, 0], [], []>} : vector<32x8xbf16>, vector<32x8xbf16>, vector<32x32xf32> -> vector<32x32xf32>
    %21 = arith.addf %20, %6 : vector<32x32xf32>
    %cst_10 = arith.constant dense<0xFF800000> : vector<32xf32>
    %22 = vector.multi_reduction <maximumf>, %21, %cst_10 [1] : vector<32x32xf32> to vector<32xf32>
    %23 = vector.shape_cast %22 : vector<32xf32> to vector<32x1xf32>
    %24 = vector.broadcast %23 : vector<32x1xf32> to vector<32x32xf32>
    %25 = arith.subf %21, %24 : vector<32x32xf32>
    %26 = math.exp %25 : vector<32x32xf32>
    %cst_11 = arith.constant dense<0.000000e+00> : vector<32xf32>
    %27 = vector.multi_reduction <add>, %26, %cst_11 [1] : vector<32x32xf32> to vector<32xf32>
    %28 = vector.shape_cast %27 : vector<32xf32> to vector<32x1xf32>
    %29 = tpu.reciprocal %28 {approx = true} : vector<32x1xf32> -> vector<32x1xf32>
    %30 = vector.broadcast %29 : vector<32x1xf32> to vector<32x32xf32>
    %31 = arith.mulf %26, %30 : vector<32x32xf32>
    %32 = arith.truncf %31 : vector<32x32xf32> to vector<32x32xbf16>
    %33 = arith.truncf %17 : vector<32x8xf32> to vector<32x8xbf16>
    %cst_12 = arith.constant dense<0.000000e+00> : vector<32x8xf32>
    %34 = tpu.matmul %32, %33, %cst_12 {dimension_numbers = #tpu.dot_dimension_numbers<[1], [0], [0], [1], [0, 0, 1, 1], [], []>} : vector<32x32xbf16>, vector<32x8xbf16>, vector<32x8xf32> -> vector<32x8xf32>
    %c0_13 = arith.constant 0 : index
    %c0_14 = arith.constant 0 : index
    %c0_15 = arith.constant 0 : index
    %35 = vector.load %arg5[%c0_13, %c0_14, %c0_15] : memref<4x8x32xbf16, #tpu.memory_space<vmem>>, vector<4x8x32xbf16>
    %c0_16 = arith.constant 0 : index
    %c0_17 = arith.constant 0 : index
    %36 = vector.load %arg6[%c0_16, %c0_17] : memref<1x32xf32, #tpu.memory_space<vmem>>, vector<1x32xf32>
    %37 = vector.extract_strided_slice %34 {offsets = [0, 0], sizes = [8, 8], strides = [1, 1]} : vector<32x8xf32> to vector<8x8xf32>
    %38 = arith.truncf %37 : vector<8x8xf32> to vector<8x8xbf16>
    %39 = vector.extract_strided_slice %35 {offsets = [0, 0, 0], sizes = [1, 8, 32], strides = [1, 1, 1]} : vector<4x8x32xbf16> to vector<1x8x32xbf16>
    %40 = vector.shape_cast %39 : vector<1x8x32xbf16> to vector<8x32xbf16>
    %cst_18 = arith.constant dense<0.000000e+00> : vector<8x32xf32>
    %41 = tpu.matmul %38, %40, %cst_18 {dimension_numbers = #tpu.dot_dimension_numbers<[1], [0], [0], [1], [0, 0, 1, 1], [], []>} : vector<8x8xbf16>, vector<8x32xbf16>, vector<8x32xf32> -> vector<8x32xf32>
    %42 = vector.extract_strided_slice %34 {offsets = [8, 0], sizes = [8, 8], strides = [1, 1]} : vector<32x8xf32> to vector<8x8xf32>
    %43 = arith.truncf %42 : vector<8x8xf32> to vector<8x8xbf16>
    %44 = vector.extract_strided_slice %35 {offsets = [1, 0, 0], sizes = [1, 8, 32], strides = [1, 1, 1]} : vector<4x8x32xbf16> to vector<1x8x32xbf16>
    %45 = vector.shape_cast %44 : vector<1x8x32xbf16> to vector<8x32xbf16>
    %cst_19 = arith.constant dense<0.000000e+00> : vector<8x32xf32>
    %46 = tpu.matmul %43, %45, %cst_19 {dimension_numbers = #tpu.dot_dimension_numbers<[1], [0], [0], [1], [0, 0, 1, 1], [], []>} : vector<8x8xbf16>, vector<8x32xbf16>, vector<8x32xf32> -> vector<8x32xf32>
    %47 = arith.addf %41, %46 : vector<8x32xf32>
    %48 = vector.extract_strided_slice %34 {offsets = [16, 0], sizes = [8, 8], strides = [1, 1]} : vector<32x8xf32> to vector<8x8xf32>
    %49 = arith.truncf %48 : vector<8x8xf32> to vector<8x8xbf16>
    %50 = vector.extract_strided_slice %35 {offsets = [2, 0, 0], sizes = [1, 8, 32], strides = [1, 1, 1]} : vector<4x8x32xbf16> to vector<1x8x32xbf16>
    %51 = vector.shape_cast %50 : vector<1x8x32xbf16> to vector<8x32xbf16>
    %cst_20 = arith.constant dense<0.000000e+00> : vector<8x32xf32>
    %52 = tpu.matmul %49, %51, %cst_20 {dimension_numbers = #tpu.dot_dimension_numbers<[1], [0], [0], [1], [0, 0, 1, 1], [], []>} : vector<8x8xbf16>, vector<8x32xbf16>, vector<8x32xf32> -> vector<8x32xf32>
    %53 = arith.addf %47, %52 : vector<8x32xf32>
    %54 = vector.extract_strided_slice %34 {offsets = [24, 0], sizes = [8, 8], strides = [1, 1]} : vector<32x8xf32> to vector<8x8xf32>
    %55 = arith.truncf %54 : vector<8x8xf32> to vector<8x8xbf16>
    %56 = vector.extract_strided_slice %35 {offsets = [3, 0, 0], sizes = [1, 8, 32], strides = [1, 1, 1]} : vector<4x8x32xbf16> to vector<1x8x32xbf16>
    %57 = vector.shape_cast %56 : vector<1x8x32xbf16> to vector<8x32xbf16>
    %cst_21 = arith.constant dense<0.000000e+00> : vector<8x32xf32>
    %58 = tpu.matmul %55, %57, %cst_21 {dimension_numbers = #tpu.dot_dimension_numbers<[1], [0], [0], [1], [0, 0, 1, 1], [], []>} : vector<8x8xbf16>, vector<8x32xbf16>, vector<8x32xf32> -> vector<8x32xf32>
    %59 = arith.addf %53, %58 : vector<8x32xf32>
    %60 = vector.broadcast %36 : vector<1x32xf32> to vector<8x32xf32>
    %61 = arith.addf %59, %60 : vector<8x32xf32>
    %62 = arith.addf %61, %1 : vector<8x32xf32>
    %c0_22 = arith.constant 0 : index
    %c0_23 = arith.constant 0 : index
    %63 = vector.load %arg7[%c0_22, %c0_23] : memref<1x32xf32, #tpu.memory_space<vmem>>, vector<1x32xf32>
    %c0_24 = arith.constant 0 : index
    %c0_25 = arith.constant 0 : index
    %64 = vector.load %arg8[%c0_24, %c0_25] : memref<1x32xf32, #tpu.memory_space<vmem>>, vector<1x32xf32>
    %cst_26 = arith.constant dense<0.000000e+00> : vector<8xf32>
    %65 = vector.multi_reduction <add>, %62, %cst_26 [1] : vector<8x32xf32> to vector<8xf32>
    %66 = vector.shape_cast %65 : vector<8xf32> to vector<8x1xf32>
    %cst_27 = arith.constant 3.200000e+01 : f32
    %67 = vector.broadcast %cst_27 : f32 to vector<8x1xf32>
    %68 = arith.divf %66, %67 : vector<8x1xf32>
    %69 = vector.broadcast %68 : vector<8x1xf32> to vector<8x32xf32>
    %70 = arith.subf %62, %69 : vector<8x32xf32>
    %71 = arith.mulf %70, %70 : vector<8x32xf32>
    %cst_28 = arith.constant dense<0.000000e+00> : vector<8xf32>
    %72 = vector.multi_reduction <add>, %71, %cst_28 [1] : vector<8x32xf32> to vector<8xf32>
    %73 = vector.shape_cast %72 : vector<8xf32> to vector<8x1xf32>
    %cst_29 = arith.constant 3.200000e+01 : f32
    %74 = vector.broadcast %cst_29 : f32 to vector<8x1xf32>
    %75 = arith.divf %73, %74 : vector<8x1xf32>
    %76 = vector.broadcast %68 : vector<8x1xf32> to vector<8x32xf32>
    %77 = arith.subf %62, %76 : vector<8x32xf32>
    %cst_30 = arith.constant 9.99999974E-6 : f32
    %78 = vector.broadcast %cst_30 : f32 to vector<8x1xf32>
    %79 = arith.addf %75, %78 : vector<8x1xf32>
    %80 = math.rsqrt %79 : vector<8x1xf32>
    %81 = vector.broadcast %80 : vector<8x1xf32> to vector<8x32xf32>
    %82 = arith.mulf %77, %81 : vector<8x32xf32>
    %83 = vector.broadcast %63 : vector<1x32xf32> to vector<8x32xf32>
    %84 = arith.mulf %82, %83 : vector<8x32xf32>
    %85 = vector.broadcast %64 : vector<1x32xf32> to vector<8x32xf32>
    %86 = arith.addf %84, %85 : vector<8x32xf32>
    %c0_31 = arith.constant 0 : index
    %c0_32 = arith.constant 0 : index
    %87 = vector.load %arg9[%c0_31, %c0_32] : memref<32x64xbf16, #tpu.memory_space<vmem>>, vector<32x64xbf16>
    %c0_33 = arith.constant 0 : index
    %c0_34 = arith.constant 0 : index
    %88 = vector.load %arg10[%c0_33, %c0_34] : memref<1x64xf32, #tpu.memory_space<vmem>>, vector<1x64xf32>
    %c0_35 = arith.constant 0 : index
    %c0_36 = arith.constant 0 : index
    %89 = vector.load %arg11[%c0_35, %c0_36] : memref<64x32xbf16, #tpu.memory_space<vmem>>, vector<64x32xbf16>
    %c0_37 = arith.constant 0 : index
    %c0_38 = arith.constant 0 : index
    %90 = vector.load %arg12[%c0_37, %c0_38] : memref<1x32xf32, #tpu.memory_space<vmem>>, vector<1x32xf32>
    %91 = arith.truncf %86 : vector<8x32xf32> to vector<8x32xbf16>
    %cst_39 = arith.constant dense<0.000000e+00> : vector<8x64xf32>
    %92 = tpu.matmul %91, %87, %cst_39 {dimension_numbers = #tpu.dot_dimension_numbers<[1], [0], [0], [1], [0, 0, 1, 1], [], []>} : vector<8x32xbf16>, vector<32x64xbf16>, vector<8x64xf32> -> vector<8x64xf32>
    %93 = vector.broadcast %88 : vector<1x64xf32> to vector<8x64xf32>
    %94 = arith.addf %92, %93 : vector<8x64xf32>
    %cst_40 = arith.constant 0.000000e+00 : f32
    %95 = vector.broadcast %cst_40 : f32 to vector<8x64xf32>
    %96 = arith.maximumf %94, %95 : vector<8x64xf32>
    %97 = arith.truncf %96 : vector<8x64xf32> to vector<8x64xbf16>
    %cst_41 = arith.constant dense<0.000000e+00> : vector<8x32xf32>
    %98 = tpu.matmul %97, %89, %cst_41 {dimension_numbers = #tpu.dot_dimension_numbers<[1], [0], [0], [1], [0, 0, 1, 1], [], []>} : vector<8x64xbf16>, vector<64x32xbf16>, vector<8x32xf32> -> vector<8x32xf32>
    %99 = vector.broadcast %90 : vector<1x32xf32> to vector<8x32xf32>
    %100 = arith.addf %98, %99 : vector<8x32xf32>
    %101 = arith.addf %100, %86 : vector<8x32xf32>
    %c0_42 = arith.constant 0 : index
    %c0_43 = arith.constant 0 : index
    %102 = vector.load %arg13[%c0_42, %c0_43] : memref<1x32xf32, #tpu.memory_space<vmem>>, vector<1x32xf32>
    %c0_44 = arith.constant 0 : index
    %c0_45 = arith.constant 0 : index
    %103 = vector.load %arg14[%c0_44, %c0_45] : memref<1x32xf32, #tpu.memory_space<vmem>>, vector<1x32xf32>
    %cst_46 = arith.constant dense<0.000000e+00> : vector<8xf32>
    %104 = vector.multi_reduction <add>, %101, %cst_46 [1] : vector<8x32xf32> to vector<8xf32>
    %105 = vector.shape_cast %104 : vector<8xf32> to vector<8x1xf32>
    %cst_47 = arith.constant 3.200000e+01 : f32
    %106 = vector.broadcast %cst_47 : f32 to vector<8x1xf32>
    %107 = arith.divf %105, %106 : vector<8x1xf32>
    %108 = vector.broadcast %107 : vector<8x1xf32> to vector<8x32xf32>
    %109 = arith.subf %101, %108 : vector<8x32xf32>
    %110 = arith.mulf %109, %109 : vector<8x32xf32>
    %cst_48 = arith.constant dense<0.000000e+00> : vector<8xf32>
    %111 = vector.multi_reduction <add>, %110, %cst_48 [1] : vector<8x32xf32> to vector<8xf32>
    %112 = vector.shape_cast %111 : vector<8xf32> to vector<8x1xf32>
    %cst_49 = arith.constant 3.200000e+01 : f32
    %113 = vector.broadcast %cst_49 : f32 to vector<8x1xf32>
    %114 = arith.divf %112, %113 : vector<8x1xf32>
    %115 = vector.broadcast %107 : vector<8x1xf32> to vector<8x32xf32>
    %116 = arith.subf %101, %115 : vector<8x32xf32>
    %cst_50 = arith.constant 9.99999974E-6 : f32
    %117 = vector.broadcast %cst_50 : f32 to vector<8x1xf32>
    %118 = arith.addf %114, %117 : vector<8x1xf32>
    %119 = math.rsqrt %118 : vector<8x1xf32>
    %120 = vector.broadcast %119 : vector<8x1xf32> to vector<8x32xf32>
    %121 = arith.mulf %116, %120 : vector<8x32xf32>
    %122 = vector.broadcast %102 : vector<1x32xf32> to vector<8x32xf32>
    %123 = arith.mulf %121, %122 : vector<8x32xf32>
    %124 = vector.broadcast %103 : vector<1x32xf32> to vector<8x32xf32>
    %125 = arith.addf %123, %124 : vector<8x32xf32>
    %c0_51 = arith.constant 0 : index
    %c0_52 = arith.constant 0 : index
    %c0_53 = arith.constant 0 : index
    %126 = vector.load %arg15[%c0_51, %c0_52, %c0_53] : memref<1x8x32xf32, #tpu.memory_space<vmem>>, vector<1x8x32xf32>
    %127 = vector.shape_cast %126 : vector<1x8x32xf32> to vector<8x32xf32>
    %128 = vector.shape_cast %125 : vector<8x32xf32> to vector<1x8x32xf32>
    tpu.vector_store %arg15[%c0_51, %c0_52, %c0_53], %128 {strides = array<i32>} : memref<1x8x32xf32, #tpu.memory_space<vmem>>, vector<1x8x32xf32>,
    return
  }
  func.func @transform_0(%arg0: i32) -> (i32, i32, i32) {
    %c0_i32 = arith.constant 0 : i32
    %c0_i32_0 = arith.constant 0 : i32
    %c0_i32_1 = arith.constant 0 : i32
    return %arg0, %c0_i32, %c0_i32_0 : i32, i32, i32
  }
  func.func @transform_1(%arg0: i32) -> (i32, i32, i32) {
    %c0_i32 = arith.constant 0 : i32
    %c0_i32_0 = arith.constant 0 : i32
    %c0_i32_1 = arith.constant 0 : i32
    return %arg0, %c0_i32, %c0_i32_0 : i32, i32, i32
  }
  func.func @transform_2(%arg0: i32) -> (i32, i32) {
    %c0_i32 = arith.constant 0 : i32
    %c0_i32_0 = arith.constant 0 : i32
    %c0_i32_1 = arith.constant 0 : i32
    return %c0_i32, %c0_i32_0 : i32, i32
  }
  func.func @transform_3(%arg0: i32) -> (i32, i32) {
    %c0_i32 = arith.constant 0 : i32
    %c0_i32_0 = arith.constant 0 : i32
    %c0_i32_1 = arith.constant 0 : i32
    return %c0_i32, %c0_i32_0 : i32, i32
  }
  func.func @transform_4(%arg0: i32) -> (i32, i32, i32) {
    %c0_i32 = arith.constant 0 : i32
    %c0_i32_0 = arith.constant 0 : i32
    %c0_i32_1 = arith.constant 0 : i32
    %c0_i32_2 = arith.constant 0 : i32
    return %c0_i32, %c0_i32_0, %c0_i32_1 : i32, i32, i32
  }
  func.func @transform_5(%arg0: i32) -> (i32, i32) {
    %c0_i32 = arith.constant 0 : i32
    %c0_i32_0 = arith.constant 0 : i32
    %c0_i32_1 = arith.constant 0 : i32
    return %c0_i32, %c0_i32_0 : i32, i32
  }
  func.func @transform_6(%arg0: i32) -> (i32, i32) {
    %c0_i32 = arith.constant 0 : i32
    %c0_i32_0 = arith.constant 0 : i32
    %c0_i32_1 = arith.constant 0 : i32
    return %c0_i32, %c0_i32_0 : i32, i32
  }
  func.func @transform_7(%arg0: i32) -> (i32, i32) {
    %c0_i32 = arith.constant 0 : i32
    %c0_i32_0 = arith.constant 0 : i32
    %c0_i32_1 = arith.constant 0 : i32
    return %c0_i32, %c0_i32_0 : i32, i32
  }
  func.func @transform_8(%arg0: i32) -> (i32, i32) {
    %c0_i32 = arith.constant 0 : i32
    %c0_i32_0 = arith.constant 0 : i32
    %c0_i32_1 = arith.constant 0 : i32
    return %c0_i32, %c0_i32_0 : i32, i32
  }
  func.func @transform_9(%arg0: i32) -> (i32, i32) {
    %c0_i32 = arith.constant 0 : i32
    %c0_i32_0 = arith.constant 0 : i32
    %c0_i32_1 = arith.constant 0 : i32
    return %c0_i32, %c0_i32_0 : i32, i32
  }
  func.func @transform_10(%arg0: i32) -> (i32, i32) {
    %c0_i32 = arith.constant 0 : i32
    %c0_i32_0 = arith.constant 0 : i32
    %c0_i32_1 = arith.constant 0 : i32
    return %c0_i32, %c0_i32_0 : i32, i32
  }
  func.func @transform_11(%arg0: i32) -> (i32, i32) {
    %c0_i32 = arith.constant 0 : i32
    %c0_i32_0 = arith.constant 0 : i32
    %c0_i32_1 = arith.constant 0 : i32
    return %c0_i32, %c0_i32_0 : i32, i32
  }
  func.func @transform_12(%arg0: i32) -> (i32, i32) {
    %c0_i32 = arith.constant 0 : i32
    %c0_i32_0 = arith.constant 0 : i32
    %c0_i32_1 = arith.constant 0 : i32
    return %c0_i32, %c0_i32_0 : i32, i32
  }
  func.func @transform_13(%arg0: i32) -> (i32, i32) {
    %c0_i32 = arith.constant 0 : i32
    %c0_i32_0 = arith.constant 0 : i32
    %c0_i32_1 = arith.constant 0 : i32
    return %c0_i32, %c0_i32_0 : i32, i32
  }
  func.func @transform_14(%arg0: i32) -> (i32, i32, i32) {
    %c0_i32 = arith.constant 0 : i32
    %c0_i32_0 = arith.constant 0 : i32
    %c0_i32_1 = arith.constant 0 : i32
    return %arg0, %c0_i32, %c0_i32_0 : i32, i32, i32
  }
}

module attributes {stable_mosaic.version = 11 : i64} {
  func.func @_decoder_block_kernel(%arg0: i32, %arg1: memref<1x8x32xf32, #tpu.memory_space<vmem>>, %arg2: memref<1x8x32xf32, #tpu.memory_space<vmem>>, %arg3: memref<1x1x32xf32, #tpu.memory_space<vmem>>, %arg4: memref<32x32xf32, #tpu.memory_space<vmem>>, %arg5: memref<32x32xf32, #tpu.memory_space<vmem>>, %arg6: memref<8x24xbf16, #tpu.memory_space<vmem>>, %arg7: memref<4x8x32xbf16, #tpu.memory_space<vmem>>, %arg8: memref<1x32xf32, #tpu.memory_space<vmem>>, %arg9: memref<1x32xf32, #tpu.memory_space<vmem>>, %arg10: memref<1x32xf32, #tpu.memory_space<vmem>>, %arg11: memref<8x24xbf16, #tpu.memory_space<vmem>>, %arg12: memref<4x8x32xbf16, #tpu.memory_space<vmem>>, %arg13: memref<1x32xf32, #tpu.memory_space<vmem>>, %arg14: memref<1x32xf32, #tpu.memory_space<vmem>>, %arg15: memref<1x32xf32, #tpu.memory_space<vmem>>, %arg16: memref<32x64xbf16, #tpu.memory_space<vmem>>, %arg17: memref<1x64xf32, #tpu.memory_space<vmem>>, %arg18: memref<64x32xbf16, #tpu.memory_space<vmem>>, %arg19: memref<1x32xf32, #tpu.memory_space<vmem>>, %arg20: memref<1x32xf32, #tpu.memory_space<vmem>>, %arg21: memref<1x32xf32, #tpu.memory_space<vmem>>, %arg22: memref<1x8x32xf32, #tpu.memory_space<vmem>>) attributes {dimension_semantics = [#tpu.dimension_semantics<parallel>], iteration_bounds = array<i64: 2>, scalar_prefetch = 0 : i64, scratch_operands = 0 : i64, tpu.core_type = #tpu.core_type<tc>, window_params = [{transform_indices = @transform_0, window_bounds = array<i64: 1, 8, 32>}, {transform_indices = @transform_1, window_bounds = array<i64: 1, 8, 32>}, {transform_indices = @transform_2, window_bounds = array<i64: 1, 1, 32>}, {pipeline_mode = #tpu.pipeline_mode<synchronous>, transform_indices = @transform_3, window_bounds = array<i64: 32, 32>}, {pipeline_mode = #tpu.pipeline_mode<synchronous>, transform_indices = @transform_4, window_bounds = array<i64: 32, 32>}, {pipeline_mode = #tpu.pipeline_mode<synchronous>, transform_indices = @transform_5, window_bounds = array<i64: 8, 24>}, {pipeline_mode = #tpu.pipeline_mode<synchronous>, transform_indices = @transform_6, window_bounds = array<i64: 4, 8, 32>}, {pipeline_mode = #tpu.pipeline_mode<synchronous>, transform_indices = @transform_7, window_bounds = array<i64: 1, 32>}, {pipeline_mode = #tpu.pipeline_mode<synchronous>, transform_indices = @transform_8, window_bounds = array<i64: 1, 32>}, {pipeline_mode = #tpu.pipeline_mode<synchronous>, transform_indices = @transform_9, window_bounds = array<i64: 1, 32>}, {pipeline_mode = #tpu.pipeline_mode<synchronous>, transform_indices = @transform_10, window_bounds = array<i64: 8, 24>}, {pipeline_mode = #tpu.pipeline_mode<synchronous>, transform_indices = @transform_11, window_bounds = array<i64: 4, 8, 32>}, {pipeline_mode = #tpu.pipeline_mode<synchronous>, transform_indices = @transform_12, window_bounds = array<i64: 1, 32>}, {pipeline_mode = #tpu.pipeline_mode<synchronous>, transform_indices = @transform_13, window_bounds = array<i64: 1, 32>}, {pipeline_mode = #tpu.pipeline_mode<synchronous>, transform_indices = @transform_14, window_bounds = array<i64: 1, 32>}, {pipeline_mode = #tpu.pipeline_mode<synchronous>, transform_indices = @transform_15, window_bounds = array<i64: 32, 64>}, {pipeline_mode = #tpu.pipeline_mode<synchronous>, transform_indices = @transform_16, window_bounds = array<i64: 1, 64>}, {pipeline_mode = #tpu.pipeline_mode<synchronous>, transform_indices = @transform_17, window_bounds = array<i64: 64, 32>}, {pipeline_mode = #tpu.pipeline_mode<synchronous>, transform_indices = @transform_18, window_bounds = array<i64: 1, 32>}, {pipeline_mode = #tpu.pipeline_mode<synchronous>, transform_indices = @transform_19, window_bounds = array<i64: 1, 32>}, {pipeline_mode = #tpu.pipeline_mode<synchronous>, transform_indices = @transform_20, window_bounds = array<i64: 1, 32>}, {transform_indices = @transform_21, window_bounds = array<i64: 1, 8, 32>}]} {
    %c0 = arith.constant 0 : index
    %c0_0 = arith.constant 0 : index
    %c0_1 = arith.constant 0 : index
    %0 = vector.load %arg1[%c0, %c0_0, %c0_1] : memref<1x8x32xf32, #tpu.memory_space<vmem>>, vector<1x8x32xf32>
    %1 = vector.shape_cast %0 : vector<1x8x32xf32> to vector<8x32xf32>
    %c0_2 = arith.constant 0 : index
    %c0_3 = arith.constant 0 : index
    %c0_4 = arith.constant 0 : index
    %2 = vector.load %arg2[%c0_2, %c0_3, %c0_4] : memref<1x8x32xf32, #tpu.memory_space<vmem>>, vector<1x8x32xf32>
    %3 = vector.shape_cast %2 : vector<1x8x32xf32> to vector<8x32xf32>
    %c0_5 = arith.constant 0 : index
    %c0_6 = arith.constant 0 : index
    %4 = vector.load %arg6[%c0_5, %c0_6] : memref<8x24xbf16, #tpu.memory_space<vmem>>, vector<8x24xbf16>
    %c0_7 = arith.constant 0 : index
    %c0_8 = arith.constant 0 : index
    %5 = vector.load %arg4[%c0_7, %c0_8] : memref<32x32xf32, #tpu.memory_space<vmem>>, vector<32x32xf32>
    %6 = vector.extract_strided_slice %1 {offsets = [0, 0], sizes = [8, 8], strides = [1, 1]} : vector<8x32xf32> to vector<8x8xf32>
    %7 = vector.extract_strided_slice %1 {offsets = [0, 8], sizes = [8, 8], strides = [1, 1]} : vector<8x32xf32> to vector<8x8xf32>
    %8 = vector.extract_strided_slice %1 {offsets = [0, 16], sizes = [8, 8], strides = [1, 1]} : vector<8x32xf32> to vector<8x8xf32>
    %9 = vector.extract_strided_slice %1 {offsets = [0, 24], sizes = [8, 8], strides = [1, 1]} : vector<8x32xf32> to vector<8x8xf32>
    %10 = tpu.concatenate %6, %7, %8, %9 in 0 : vector<8x8xf32>, vector<8x8xf32>, vector<8x8xf32>, vector<8x8xf32> -> vector<32x8xf32>
    %11 = arith.truncf %10 : vector<32x8xf32> to vector<32x8xbf16>
    %cst = arith.constant dense<0.000000e+00> : vector<32x24xf32>
    %12 = tpu.matmul %11, %4, %cst {dimension_numbers = #tpu.dot_dimension_numbers<[1], [0], [0], [1], [0, 0, 1, 1], [], []>} : vector<32x8xbf16>, vector<8x24xbf16>, vector<32x24xf32> -> vector<32x24xf32>
    %13 = vector.extract_strided_slice %12 {offsets = [0, 0], sizes = [32, 8], strides = [1, 1]} : vector<32x24xf32> to vector<32x8xf32>
    %14 = vector.extract_strided_slice %12 {offsets = [0, 8], sizes = [32, 8], strides = [1, 1]} : vector<32x24xf32> to vector<32x8xf32>
    %15 = vector.extract_strided_slice %12 {offsets = [0, 16], sizes = [32, 8], strides = [1, 1]} : vector<32x24xf32> to vector<32x8xf32>
    %16 = arith.truncf %13 : vector<32x8xf32> to vector<32x8xbf16>
    %17 = arith.truncf %14 : vector<32x8xf32> to vector<32x8xbf16>
    %cst_9 = arith.constant dense<0.000000e+00> : vector<32x32xf32>
    %18 = tpu.matmul %16, %17, %cst_9 {dimension_numbers = #tpu.dot_dimension_numbers<[1], [1], [0], [0], [0, 0, 1, 0], [], []>} : vector<32x8xbf16>, vector<32x8xbf16>, vector<32x32xf32> -> vector<32x32xf32>
    %19 = arith.addf %18, %5 : vector<32x32xf32>
    %cst_10 = arith.constant dense<0xFF800000> : vector<32xf32>
    %20 = vector.multi_reduction <maximumf>, %19, %cst_10 [1] : vector<32x32xf32> to vector<32xf32>
    %21 = vector.shape_cast %20 : vector<32xf32> to vector<32x1xf32>
    %22 = vector.broadcast %21 : vector<32x1xf32> to vector<32x32xf32>
    %23 = arith.subf %19, %22 : vector<32x32xf32>
    %24 = math.exp %23 : vector<32x32xf32>
    %cst_11 = arith.constant dense<0.000000e+00> : vector<32xf32>
    %25 = vector.multi_reduction <add>, %24, %cst_11 [1] : vector<32x32xf32> to vector<32xf32>
    %26 = vector.shape_cast %25 : vector<32xf32> to vector<32x1xf32>
    %27 = tpu.reciprocal %26 {approx = true} : vector<32x1xf32> -> vector<32x1xf32>
    %28 = vector.broadcast %27 : vector<32x1xf32> to vector<32x32xf32>
    %29 = arith.mulf %24, %28 : vector<32x32xf32>
    %30 = arith.truncf %29 : vector<32x32xf32> to vector<32x32xbf16>
    %31 = arith.truncf %15 : vector<32x8xf32> to vector<32x8xbf16>
    %cst_12 = arith.constant dense<0.000000e+00> : vector<32x8xf32>
    %32 = tpu.matmul %30, %31, %cst_12 {dimension_numbers = #tpu.dot_dimension_numbers<[1], [0], [0], [1], [0, 0, 1, 1], [], []>} : vector<32x32xbf16>, vector<32x8xbf16>, vector<32x8xf32> -> vector<32x8xf32>
    %c0_13 = arith.constant 0 : index
    %c0_14 = arith.constant 0 : index
    %c0_15 = arith.constant 0 : index
    %33 = vector.load %arg7[%c0_13, %c0_14, %c0_15] : memref<4x8x32xbf16, #tpu.memory_space<vmem>>, vector<4x8x32xbf16>
    %c0_16 = arith.constant 0 : index
    %c0_17 = arith.constant 0 : index
    %34 = vector.load %arg8[%c0_16, %c0_17] : memref<1x32xf32, #tpu.memory_space<vmem>>, vector<1x32xf32>
    %35 = vector.extract_strided_slice %32 {offsets = [0, 0], sizes = [8, 8], strides = [1, 1]} : vector<32x8xf32> to vector<8x8xf32>
    %36 = arith.truncf %35 : vector<8x8xf32> to vector<8x8xbf16>
    %37 = vector.extract_strided_slice %33 {offsets = [0, 0, 0], sizes = [1, 8, 32], strides = [1, 1, 1]} : vector<4x8x32xbf16> to vector<1x8x32xbf16>
    %38 = vector.shape_cast %37 : vector<1x8x32xbf16> to vector<8x32xbf16>
    %cst_18 = arith.constant dense<0.000000e+00> : vector<8x32xf32>
    %39 = tpu.matmul %36, %38, %cst_18 {dimension_numbers = #tpu.dot_dimension_numbers<[1], [0], [0], [1], [0, 0, 1, 1], [], []>} : vector<8x8xbf16>, vector<8x32xbf16>, vector<8x32xf32> -> vector<8x32xf32>
    %40 = vector.extract_strided_slice %32 {offsets = [8, 0], sizes = [8, 8], strides = [1, 1]} : vector<32x8xf32> to vector<8x8xf32>
    %41 = arith.truncf %40 : vector<8x8xf32> to vector<8x8xbf16>
    %42 = vector.extract_strided_slice %33 {offsets = [1, 0, 0], sizes = [1, 8, 32], strides = [1, 1, 1]} : vector<4x8x32xbf16> to vector<1x8x32xbf16>
    %43 = vector.shape_cast %42 : vector<1x8x32xbf16> to vector<8x32xbf16>
    %cst_19 = arith.constant dense<0.000000e+00> : vector<8x32xf32>
    %44 = tpu.matmul %41, %43, %cst_19 {dimension_numbers = #tpu.dot_dimension_numbers<[1], [0], [0], [1], [0, 0, 1, 1], [], []>} : vector<8x8xbf16>, vector<8x32xbf16>, vector<8x32xf32> -> vector<8x32xf32>
    %45 = arith.addf %39, %44 : vector<8x32xf32>
    %46 = vector.extract_strided_slice %32 {offsets = [16, 0], sizes = [8, 8], strides = [1, 1]} : vector<32x8xf32> to vector<8x8xf32>
    %47 = arith.truncf %46 : vector<8x8xf32> to vector<8x8xbf16>
    %48 = vector.extract_strided_slice %33 {offsets = [2, 0, 0], sizes = [1, 8, 32], strides = [1, 1, 1]} : vector<4x8x32xbf16> to vector<1x8x32xbf16>
    %49 = vector.shape_cast %48 : vector<1x8x32xbf16> to vector<8x32xbf16>
    %cst_20 = arith.constant dense<0.000000e+00> : vector<8x32xf32>
    %50 = tpu.matmul %47, %49, %cst_20 {dimension_numbers = #tpu.dot_dimension_numbers<[1], [0], [0], [1], [0, 0, 1, 1], [], []>} : vector<8x8xbf16>, vector<8x32xbf16>, vector<8x32xf32> -> vector<8x32xf32>
    %51 = arith.addf %45, %50 : vector<8x32xf32>
    %52 = vector.extract_strided_slice %32 {offsets = [24, 0], sizes = [8, 8], strides = [1, 1]} : vector<32x8xf32> to vector<8x8xf32>
    %53 = arith.truncf %52 : vector<8x8xf32> to vector<8x8xbf16>
    %54 = vector.extract_strided_slice %33 {offsets = [3, 0, 0], sizes = [1, 8, 32], strides = [1, 1, 1]} : vector<4x8x32xbf16> to vector<1x8x32xbf16>
    %55 = vector.shape_cast %54 : vector<1x8x32xbf16> to vector<8x32xbf16>
    %cst_21 = arith.constant dense<0.000000e+00> : vector<8x32xf32>
    %56 = tpu.matmul %53, %55, %cst_21 {dimension_numbers = #tpu.dot_dimension_numbers<[1], [0], [0], [1], [0, 0, 1, 1], [], []>} : vector<8x8xbf16>, vector<8x32xbf16>, vector<8x32xf32> -> vector<8x32xf32>
    %57 = arith.addf %51, %56 : vector<8x32xf32>
    %58 = vector.broadcast %34 : vector<1x32xf32> to vector<8x32xf32>
    %59 = arith.addf %57, %58 : vector<8x32xf32>
    %60 = arith.addf %59, %1 : vector<8x32xf32>
    %c0_22 = arith.constant 0 : index
    %c0_23 = arith.constant 0 : index
    %61 = vector.load %arg9[%c0_22, %c0_23] : memref<1x32xf32, #tpu.memory_space<vmem>>, vector<1x32xf32>
    %c0_24 = arith.constant 0 : index
    %c0_25 = arith.constant 0 : index
    %62 = vector.load %arg10[%c0_24, %c0_25] : memref<1x32xf32, #tpu.memory_space<vmem>>, vector<1x32xf32>
    %cst_26 = arith.constant dense<0.000000e+00> : vector<8xf32>
    %63 = vector.multi_reduction <add>, %60, %cst_26 [1] : vector<8x32xf32> to vector<8xf32>
    %64 = vector.shape_cast %63 : vector<8xf32> to vector<8x1xf32>
    %cst_27 = arith.constant 3.200000e+01 : f32
    %65 = vector.broadcast %cst_27 : f32 to vector<8x1xf32>
    %66 = arith.divf %64, %65 : vector<8x1xf32>
    %67 = vector.broadcast %66 : vector<8x1xf32> to vector<8x32xf32>
    %68 = arith.subf %60, %67 : vector<8x32xf32>
    %69 = arith.mulf %68, %68 : vector<8x32xf32>
    %cst_28 = arith.constant dense<0.000000e+00> : vector<8xf32>
    %70 = vector.multi_reduction <add>, %69, %cst_28 [1] : vector<8x32xf32> to vector<8xf32>
    %71 = vector.shape_cast %70 : vector<8xf32> to vector<8x1xf32>
    %cst_29 = arith.constant 3.200000e+01 : f32
    %72 = vector.broadcast %cst_29 : f32 to vector<8x1xf32>
    %73 = arith.divf %71, %72 : vector<8x1xf32>
    %74 = vector.broadcast %66 : vector<8x1xf32> to vector<8x32xf32>
    %75 = arith.subf %60, %74 : vector<8x32xf32>
    %cst_30 = arith.constant 9.99999974E-6 : f32
    %76 = vector.broadcast %cst_30 : f32 to vector<8x1xf32>
    %77 = arith.addf %73, %76 : vector<8x1xf32>
    %78 = math.rsqrt %77 : vector<8x1xf32>
    %79 = vector.broadcast %78 : vector<8x1xf32> to vector<8x32xf32>
    %80 = arith.mulf %75, %79 : vector<8x32xf32>
    %81 = vector.broadcast %61 : vector<1x32xf32> to vector<8x32xf32>
    %82 = arith.mulf %80, %81 : vector<8x32xf32>
    %83 = vector.broadcast %62 : vector<1x32xf32> to vector<8x32xf32>
    %84 = arith.addf %82, %83 : vector<8x32xf32>
    %c0_31 = arith.constant 0 : index
    %c0_32 = arith.constant 0 : index
    %85 = vector.load %arg5[%c0_31, %c0_32] : memref<32x32xf32, #tpu.memory_space<vmem>>, vector<32x32xf32>
    %c0_33 = arith.constant 0 : index
    %c0_34 = arith.constant 0 : index
    %c0_35 = arith.constant 0 : index
    %86 = vector.load %arg3[%c0_33, %c0_34, %c0_35] : memref<1x1x32xf32, #tpu.memory_space<vmem>>, vector<1x1x32xf32>
    %87 = vector.shape_cast %86 : vector<1x1x32xf32> to vector<1x32xf32>
    %88 = vector.broadcast %87 : vector<1x32xf32> to vector<32x32xf32>
    %89 = arith.addf %85, %88 : vector<32x32xf32>
    %c0_36 = arith.constant 0 : index
    %c0_37 = arith.constant 0 : index
    %90 = vector.load %arg11[%c0_36, %c0_37] : memref<8x24xbf16, #tpu.memory_space<vmem>>, vector<8x24xbf16>
    %91 = vector.extract_strided_slice %84 {offsets = [0, 0], sizes = [8, 8], strides = [1, 1]} : vector<8x32xf32> to vector<8x8xf32>
    %92 = vector.extract_strided_slice %84 {offsets = [0, 8], sizes = [8, 8], strides = [1, 1]} : vector<8x32xf32> to vector<8x8xf32>
    %93 = vector.extract_strided_slice %84 {offsets = [0, 16], sizes = [8, 8], strides = [1, 1]} : vector<8x32xf32> to vector<8x8xf32>
    %94 = vector.extract_strided_slice %84 {offsets = [0, 24], sizes = [8, 8], strides = [1, 1]} : vector<8x32xf32> to vector<8x8xf32>
    %95 = tpu.concatenate %91, %92, %93, %94 in 0 : vector<8x8xf32>, vector<8x8xf32>, vector<8x8xf32>, vector<8x8xf32> -> vector<32x8xf32>
    %96 = arith.truncf %95 : vector<32x8xf32> to vector<32x8xbf16>
    %cst_38 = arith.constant dense<0.000000e+00> : vector<32x24xf32>
    %97 = tpu.matmul %96, %90, %cst_38 {dimension_numbers = #tpu.dot_dimension_numbers<[1], [0], [0], [1], [0, 0, 1, 1], [], []>} : vector<32x8xbf16>, vector<8x24xbf16>, vector<32x24xf32> -> vector<32x24xf32>
    %98 = vector.extract_strided_slice %3 {offsets = [0, 0], sizes = [8, 8], strides = [1, 1]} : vector<8x32xf32> to vector<8x8xf32>
    %99 = vector.extract_strided_slice %3 {offsets = [0, 8], sizes = [8, 8], strides = [1, 1]} : vector<8x32xf32> to vector<8x8xf32>
    %100 = vector.extract_strided_slice %3 {offsets = [0, 16], sizes = [8, 8], strides = [1, 1]} : vector<8x32xf32> to vector<8x8xf32>
    %101 = vector.extract_strided_slice %3 {offsets = [0, 24], sizes = [8, 8], strides = [1, 1]} : vector<8x32xf32> to vector<8x8xf32>
    %102 = tpu.concatenate %98, %99, %100, %101 in 0 : vector<8x8xf32>, vector<8x8xf32>, vector<8x8xf32>, vector<8x8xf32> -> vector<32x8xf32>
    %103 = arith.truncf %102 : vector<32x8xf32> to vector<32x8xbf16>
    %cst_39 = arith.constant dense<0.000000e+00> : vector<32x24xf32>
    %104 = tpu.matmul %103, %90, %cst_39 {dimension_numbers = #tpu.dot_dimension_numbers<[1], [0], [0], [1], [0, 0, 1, 1], [], []>} : vector<32x8xbf16>, vector<8x24xbf16>, vector<32x24xf32> -> vector<32x24xf32>
    %105 = vector.extract_strided_slice %97 {offsets = [0, 0], sizes = [32, 8], strides = [1, 1]} : vector<32x24xf32> to vector<32x8xf32>
    %106 = vector.extract_strided_slice %104 {offsets = [0, 8], sizes = [32, 8], strides = [1, 1]} : vector<32x24xf32> to vector<32x8xf32>
    %107 = vector.extract_strided_slice %104 {offsets = [0, 16], sizes = [32, 8], strides = [1, 1]} : vector<32x24xf32> to vector<32x8xf32>
    %108 = arith.truncf %105 : vector<32x8xf32> to vector<32x8xbf16>
    %109 = arith.truncf %106 : vector<32x8xf32> to vector<32x8xbf16>
    %cst_40 = arith.constant dense<0.000000e+00> : vector<32x32xf32>
    %110 = tpu.matmul %108, %109, %cst_40 {dimension_numbers = #tpu.dot_dimension_numbers<[1], [1], [0], [0], [0, 0, 1, 0], [], []>} : vector<32x8xbf16>, vector<32x8xbf16>, vector<32x32xf32> -> vector<32x32xf32>
    %111 = arith.addf %110, %89 : vector<32x32xf32>
    %cst_41 = arith.constant dense<0xFF800000> : vector<32xf32>
    %112 = vector.multi_reduction <maximumf>, %111, %cst_41 [1] : vector<32x32xf32> to vector<32xf32>
    %113 = vector.shape_cast %112 : vector<32xf32> to vector<32x1xf32>
    %114 = vector.broadcast %113 : vector<32x1xf32> to vector<32x32xf32>
    %115 = arith.subf %111, %114 : vector<32x32xf32>
    %116 = math.exp %115 : vector<32x32xf32>
    %cst_42 = arith.constant dense<0.000000e+00> : vector<32xf32>
    %117 = vector.multi_reduction <add>, %116, %cst_42 [1] : vector<32x32xf32> to vector<32xf32>
    %118 = vector.shape_cast %117 : vector<32xf32> to vector<32x1xf32>
    %119 = tpu.reciprocal %118 {approx = true} : vector<32x1xf32> -> vector<32x1xf32>
    %120 = vector.broadcast %119 : vector<32x1xf32> to vector<32x32xf32>
    %121 = arith.mulf %116, %120 : vector<32x32xf32>
    %122 = arith.truncf %121 : vector<32x32xf32> to vector<32x32xbf16>
    %123 = arith.truncf %107 : vector<32x8xf32> to vector<32x8xbf16>
    %cst_43 = arith.constant dense<0.000000e+00> : vector<32x8xf32>
    %124 = tpu.matmul %122, %123, %cst_43 {dimension_numbers = #tpu.dot_dimension_numbers<[1], [0], [0], [1], [0, 0, 1, 1], [], []>} : vector<32x32xbf16>, vector<32x8xbf16>, vector<32x8xf32> -> vector<32x8xf32>
    %c0_44 = arith.constant 0 : index
    %c0_45 = arith.constant 0 : index
    %c0_46 = arith.constant 0 : index
    %125 = vector.load %arg12[%c0_44, %c0_45, %c0_46] : memref<4x8x32xbf16, #tpu.memory_space<vmem>>, vector<4x8x32xbf16>
    %c0_47 = arith.constant 0 : index
    %c0_48 = arith.constant 0 : index
    %126 = vector.load %arg13[%c0_47, %c0_48] : memref<1x32xf32, #tpu.memory_space<vmem>>, vector<1x32xf32>
    %127 = vector.extract_strided_slice %124 {offsets = [0, 0], sizes = [8, 8], strides = [1, 1]} : vector<32x8xf32> to vector<8x8xf32>
    %128 = arith.truncf %127 : vector<8x8xf32> to vector<8x8xbf16>
    %129 = vector.extract_strided_slice %125 {offsets = [0, 0, 0], sizes = [1, 8, 32], strides = [1, 1, 1]} : vector<4x8x32xbf16> to vector<1x8x32xbf16>
    %130 = vector.shape_cast %129 : vector<1x8x32xbf16> to vector<8x32xbf16>
    %cst_49 = arith.constant dense<0.000000e+00> : vector<8x32xf32>
    %131 = tpu.matmul %128, %130, %cst_49 {dimension_numbers = #tpu.dot_dimension_numbers<[1], [0], [0], [1], [0, 0, 1, 1], [], []>} : vector<8x8xbf16>, vector<8x32xbf16>, vector<8x32xf32> -> vector<8x32xf32>
    %132 = vector.extract_strided_slice %124 {offsets = [8, 0], sizes = [8, 8], strides = [1, 1]} : vector<32x8xf32> to vector<8x8xf32>
    %133 = arith.truncf %132 : vector<8x8xf32> to vector<8x8xbf16>
    %134 = vector.extract_strided_slice %125 {offsets = [1, 0, 0], sizes = [1, 8, 32], strides = [1, 1, 1]} : vector<4x8x32xbf16> to vector<1x8x32xbf16>
    %135 = vector.shape_cast %134 : vector<1x8x32xbf16> to vector<8x32xbf16>
    %cst_50 = arith.constant dense<0.000000e+00> : vector<8x32xf32>
    %136 = tpu.matmul %133, %135, %cst_50 {dimension_numbers = #tpu.dot_dimension_numbers<[1], [0], [0], [1], [0, 0, 1, 1], [], []>} : vector<8x8xbf16>, vector<8x32xbf16>, vector<8x32xf32> -> vector<8x32xf32>
    %137 = arith.addf %131, %136 : vector<8x32xf32>
    %138 = vector.extract_strided_slice %124 {offsets = [16, 0], sizes = [8, 8], strides = [1, 1]} : vector<32x8xf32> to vector<8x8xf32>
    %139 = arith.truncf %138 : vector<8x8xf32> to vector<8x8xbf16>
    %140 = vector.extract_strided_slice %125 {offsets = [2, 0, 0], sizes = [1, 8, 32], strides = [1, 1, 1]} : vector<4x8x32xbf16> to vector<1x8x32xbf16>
    %141 = vector.shape_cast %140 : vector<1x8x32xbf16> to vector<8x32xbf16>
    %cst_51 = arith.constant dense<0.000000e+00> : vector<8x32xf32>
    %142 = tpu.matmul %139, %141, %cst_51 {dimension_numbers = #tpu.dot_dimension_numbers<[1], [0], [0], [1], [0, 0, 1, 1], [], []>} : vector<8x8xbf16>, vector<8x32xbf16>, vector<8x32xf32> -> vector<8x32xf32>
    %143 = arith.addf %137, %142 : vector<8x32xf32>
    %144 = vector.extract_strided_slice %124 {offsets = [24, 0], sizes = [8, 8], strides = [1, 1]} : vector<32x8xf32> to vector<8x8xf32>
    %145 = arith.truncf %144 : vector<8x8xf32> to vector<8x8xbf16>
    %146 = vector.extract_strided_slice %125 {offsets = [3, 0, 0], sizes = [1, 8, 32], strides = [1, 1, 1]} : vector<4x8x32xbf16> to vector<1x8x32xbf16>
    %147 = vector.shape_cast %146 : vector<1x8x32xbf16> to vector<8x32xbf16>
    %cst_52 = arith.constant dense<0.000000e+00> : vector<8x32xf32>
    %148 = tpu.matmul %145, %147, %cst_52 {dimension_numbers = #tpu.dot_dimension_numbers<[1], [0], [0], [1], [0, 0, 1, 1], [], []>} : vector<8x8xbf16>, vector<8x32xbf16>, vector<8x32xf32> -> vector<8x32xf32>
    %149 = arith.addf %143, %148 : vector<8x32xf32>
    %150 = vector.broadcast %126 : vector<1x32xf32> to vector<8x32xf32>
    %151 = arith.addf %149, %150 : vector<8x32xf32>
    %152 = arith.addf %151, %84 : vector<8x32xf32>
    %c0_53 = arith.constant 0 : index
    %c0_54 = arith.constant 0 : index
    %153 = vector.load %arg14[%c0_53, %c0_54] : memref<1x32xf32, #tpu.memory_space<vmem>>, vector<1x32xf32>
    %c0_55 = arith.constant 0 : index
    %c0_56 = arith.constant 0 : index
    %154 = vector.load %arg15[%c0_55, %c0_56] : memref<1x32xf32, #tpu.memory_space<vmem>>, vector<1x32xf32>
    %cst_57 = arith.constant dense<0.000000e+00> : vector<8xf32>
    %155 = vector.multi_reduction <add>, %152, %cst_57 [1] : vector<8x32xf32> to vector<8xf32>
    %156 = vector.shape_cast %155 : vector<8xf32> to vector<8x1xf32>
    %cst_58 = arith.constant 3.200000e+01 : f32
    %157 = vector.broadcast %cst_58 : f32 to vector<8x1xf32>
    %158 = arith.divf %156, %157 : vector<8x1xf32>
    %159 = vector.broadcast %158 : vector<8x1xf32> to vector<8x32xf32>
    %160 = arith.subf %152, %159 : vector<8x32xf32>
    %161 = arith.mulf %160, %160 : vector<8x32xf32>
    %cst_59 = arith.constant dense<0.000000e+00> : vector<8xf32>
    %162 = vector.multi_reduction <add>, %161, %cst_59 [1] : vector<8x32xf32> to vector<8xf32>
    %163 = vector.shape_cast %162 : vector<8xf32> to vector<8x1xf32>
    %cst_60 = arith.constant 3.200000e+01 : f32
    %164 = vector.broadcast %cst_60 : f32 to vector<8x1xf32>
    %165 = arith.divf %163, %164 : vector<8x1xf32>
    %166 = vector.broadcast %158 : vector<8x1xf32> to vector<8x32xf32>
    %167 = arith.subf %152, %166 : vector<8x32xf32>
    %cst_61 = arith.constant 9.99999974E-6 : f32
    %168 = vector.broadcast %cst_61 : f32 to vector<8x1xf32>
    %169 = arith.addf %165, %168 : vector<8x1xf32>
    %170 = math.rsqrt %169 : vector<8x1xf32>
    %171 = vector.broadcast %170 : vector<8x1xf32> to vector<8x32xf32>
    %172 = arith.mulf %167, %171 : vector<8x32xf32>
    %173 = vector.broadcast %153 : vector<1x32xf32> to vector<8x32xf32>
    %174 = arith.mulf %172, %173 : vector<8x32xf32>
    %175 = vector.broadcast %154 : vector<1x32xf32> to vector<8x32xf32>
    %176 = arith.addf %174, %175 : vector<8x32xf32>
    %c0_62 = arith.constant 0 : index
    %c0_63 = arith.constant 0 : index
    %177 = vector.load %arg16[%c0_62, %c0_63] : memref<32x64xbf16, #tpu.memory_space<vmem>>, vector<32x64xbf16>
    %c0_64 = arith.constant 0 : index
    %c0_65 = arith.constant 0 : index
    %178 = vector.load %arg17[%c0_64, %c0_65] : memref<1x64xf32, #tpu.memory_space<vmem>>, vector<1x64xf32>
    %c0_66 = arith.constant 0 : index
    %c0_67 = arith.constant 0 : index
    %179 = vector.load %arg18[%c0_66, %c0_67] : memref<64x32xbf16, #tpu.memory_space<vmem>>, vector<64x32xbf16>
    %c0_68 = arith.constant 0 : index
    %c0_69 = arith.constant 0 : index
    %180 = vector.load %arg19[%c0_68, %c0_69] : memref<1x32xf32, #tpu.memory_space<vmem>>, vector<1x32xf32>
    %181 = arith.truncf %176 : vector<8x32xf32> to vector<8x32xbf16>
    %cst_70 = arith.constant dense<0.000000e+00> : vector<8x64xf32>
    %182 = tpu.matmul %181, %177, %cst_70 {dimension_numbers = #tpu.dot_dimension_numbers<[1], [0], [0], [1], [0, 0, 1, 1], [], []>} : vector<8x32xbf16>, vector<32x64xbf16>, vector<8x64xf32> -> vector<8x64xf32>
    %183 = vector.broadcast %178 : vector<1x64xf32> to vector<8x64xf32>
    %184 = arith.addf %182, %183 : vector<8x64xf32>
    %cst_71 = arith.constant 0.000000e+00 : f32
    %185 = vector.broadcast %cst_71 : f32 to vector<8x64xf32>
    %186 = arith.maximumf %184, %185 : vector<8x64xf32>
    %187 = arith.truncf %186 : vector<8x64xf32> to vector<8x64xbf16>
    %cst_72 = arith.constant dense<0.000000e+00> : vector<8x32xf32>
    %188 = tpu.matmul %187, %179, %cst_72 {dimension_numbers = #tpu.dot_dimension_numbers<[1], [0], [0], [1], [0, 0, 1, 1], [], []>} : vector<8x64xbf16>, vector<64x32xbf16>, vector<8x32xf32> -> vector<8x32xf32>
    %189 = vector.broadcast %180 : vector<1x32xf32> to vector<8x32xf32>
    %190 = arith.addf %188, %189 : vector<8x32xf32>
    %191 = arith.addf %190, %176 : vector<8x32xf32>
    %c0_73 = arith.constant 0 : index
    %c0_74 = arith.constant 0 : index
    %192 = vector.load %arg20[%c0_73, %c0_74] : memref<1x32xf32, #tpu.memory_space<vmem>>, vector<1x32xf32>
    %c0_75 = arith.constant 0 : index
    %c0_76 = arith.constant 0 : index
    %193 = vector.load %arg21[%c0_75, %c0_76] : memref<1x32xf32, #tpu.memory_space<vmem>>, vector<1x32xf32>
    %cst_77 = arith.constant dense<0.000000e+00> : vector<8xf32>
    %194 = vector.multi_reduction <add>, %191, %cst_77 [1] : vector<8x32xf32> to vector<8xf32>
    %195 = vector.shape_cast %194 : vector<8xf32> to vector<8x1xf32>
    %cst_78 = arith.constant 3.200000e+01 : f32
    %196 = vector.broadcast %cst_78 : f32 to vector<8x1xf32>
    %197 = arith.divf %195, %196 : vector<8x1xf32>
    %198 = vector.broadcast %197 : vector<8x1xf32> to vector<8x32xf32>
    %199 = arith.subf %191, %198 : vector<8x32xf32>
    %200 = arith.mulf %199, %199 : vector<8x32xf32>
    %cst_79 = arith.constant dense<0.000000e+00> : vector<8xf32>
    %201 = vector.multi_reduction <add>, %200, %cst_79 [1] : vector<8x32xf32> to vector<8xf32>
    %202 = vector.shape_cast %201 : vector<8xf32> to vector<8x1xf32>
    %cst_80 = arith.constant 3.200000e+01 : f32
    %203 = vector.broadcast %cst_80 : f32 to vector<8x1xf32>
    %204 = arith.divf %202, %203 : vector<8x1xf32>
    %205 = vector.broadcast %197 : vector<8x1xf32> to vector<8x32xf32>
    %206 = arith.subf %191, %205 : vector<8x32xf32>
    %cst_81 = arith.constant 9.99999974E-6 : f32
    %207 = vector.broadcast %cst_81 : f32 to vector<8x1xf32>
    %208 = arith.addf %204, %207 : vector<8x1xf32>
    %209 = math.rsqrt %208 : vector<8x1xf32>
    %210 = vector.broadcast %209 : vector<8x1xf32> to vector<8x32xf32>
    %211 = arith.mulf %206, %210 : vector<8x32xf32>
    %212 = vector.broadcast %192 : vector<1x32xf32> to vector<8x32xf32>
    %213 = arith.mulf %211, %212 : vector<8x32xf32>
    %214 = vector.broadcast %193 : vector<1x32xf32> to vector<8x32xf32>
    %215 = arith.addf %213, %214 : vector<8x32xf32>
    %c0_82 = arith.constant 0 : index
    %c0_83 = arith.constant 0 : index
    %c0_84 = arith.constant 0 : index
    %216 = vector.load %arg22[%c0_82, %c0_83, %c0_84] : memref<1x8x32xf32, #tpu.memory_space<vmem>>, vector<1x8x32xf32>
    %217 = vector.shape_cast %216 : vector<1x8x32xf32> to vector<8x32xf32>
    %218 = vector.shape_cast %215 : vector<8x32xf32> to vector<1x8x32xf32>
    tpu.vector_store %arg22[%c0_82, %c0_83, %c0_84], %218 {strides = array<i32>} : memref<1x8x32xf32, #tpu.memory_space<vmem>>, vector<1x8x32xf32>,
    return
  }
  func.func @transform_0(%arg0: i32) -> (i32, i32, i32) {
    %c0_i32 = arith.constant 0 : i32
    %c0_i32_0 = arith.constant 0 : i32
    %c0_i32_1 = arith.constant 0 : i32
    return %arg0, %c0_i32, %c0_i32_0 : i32, i32, i32
  }
  func.func @transform_1(%arg0: i32) -> (i32, i32, i32) {
    %c0_i32 = arith.constant 0 : i32
    %c0_i32_0 = arith.constant 0 : i32
    %c0_i32_1 = arith.constant 0 : i32
    return %arg0, %c0_i32, %c0_i32_0 : i32, i32, i32
  }
  func.func @transform_2(%arg0: i32) -> (i32, i32, i32) {
    %c0_i32 = arith.constant 0 : i32
    %c0_i32_0 = arith.constant 0 : i32
    %c0_i32_1 = arith.constant 0 : i32
    return %arg0, %c0_i32, %c0_i32_0 : i32, i32, i32
  }
  func.func @transform_3(%arg0: i32) -> (i32, i32) {
    %c0_i32 = arith.constant 0 : i32
    %c0_i32_0 = arith.constant 0 : i32
    %c0_i32_1 = arith.constant 0 : i32
    return %c0_i32, %c0_i32_0 : i32, i32
  }
  func.func @transform_4(%arg0: i32) -> (i32, i32) {
    %c0_i32 = arith.constant 0 : i32
    %c0_i32_0 = arith.constant 0 : i32
    %c0_i32_1 = arith.constant 0 : i32
    return %c0_i32, %c0_i32_0 : i32, i32
  }
  func.func @transform_5(%arg0: i32) -> (i32, i32) {
    %c0_i32 = arith.constant 0 : i32
    %c0_i32_0 = arith.constant 0 : i32
    %c0_i32_1 = arith.constant 0 : i32
    return %c0_i32, %c0_i32_0 : i32, i32
  }
  func.func @transform_6(%arg0: i32) -> (i32, i32, i32) {
    %c0_i32 = arith.constant 0 : i32
    %c0_i32_0 = arith.constant 0 : i32
    %c0_i32_1 = arith.constant 0 : i32
    %c0_i32_2 = arith.constant 0 : i32
    return %c0_i32, %c0_i32_0, %c0_i32_1 : i32, i32, i32
  }
  func.func @transform_7(%arg0: i32) -> (i32, i32) {
    %c0_i32 = arith.constant 0 : i32
    %c0_i32_0 = arith.constant 0 : i32
    %c0_i32_1 = arith.constant 0 : i32
    return %c0_i32, %c0_i32_0 : i32, i32
  }
  func.func @transform_8(%arg0: i32) -> (i32, i32) {
    %c0_i32 = arith.constant 0 : i32
    %c0_i32_0 = arith.constant 0 : i32
    %c0_i32_1 = arith.constant 0 : i32
    return %c0_i32, %c0_i32_0 : i32, i32
  }
  func.func @transform_9(%arg0: i32) -> (i32, i32) {
    %c0_i32 = arith.constant 0 : i32
    %c0_i32_0 = arith.constant 0 : i32
    %c0_i32_1 = arith.constant 0 : i32
    return %c0_i32, %c0_i32_0 : i32, i32
  }
  func.func @transform_10(%arg0: i32) -> (i32, i32) {
    %c0_i32 = arith.constant 0 : i32
    %c0_i32_0 = arith.constant 0 : i32
    %c0_i32_1 = arith.constant 0 : i32
    return %c0_i32, %c0_i32_0 : i32, i32
  }
  func.func @transform_11(%arg0: i32) -> (i32, i32, i32) {
    %c0_i32 = arith.constant 0 : i32
    %c0_i32_0 = arith.constant 0 : i32
    %c0_i32_1 = arith.constant 0 : i32
    %c0_i32_2 = arith.constant 0 : i32
    return %c0_i32, %c0_i32_0, %c0_i32_1 : i32, i32, i32
  }
  func.func @transform_12(%arg0: i32) -> (i32, i32) {
    %c0_i32 = arith.constant 0 : i32
    %c0_i32_0 = arith.constant 0 : i32
    %c0_i32_1 = arith.constant 0 : i32
    return %c0_i32, %c0_i32_0 : i32, i32
  }
  func.func @transform_13(%arg0: i32) -> (i32, i32) {
    %c0_i32 = arith.constant 0 : i32
    %c0_i32_0 = arith.constant 0 : i32
    %c0_i32_1 = arith.constant 0 : i32
    return %c0_i32, %c0_i32_0 : i32, i32
  }
  func.func @transform_14(%arg0: i32) -> (i32, i32) {
    %c0_i32 = arith.constant 0 : i32
    %c0_i32_0 = arith.constant 0 : i32
    %c0_i32_1 = arith.constant 0 : i32
    return %c0_i32, %c0_i32_0 : i32, i32
  }
  func.func @transform_15(%arg0: i32) -> (i32, i32) {
    %c0_i32 = arith.constant 0 : i32
    %c0_i32_0 = arith.constant 0 : i32
    %c0_i32_1 = arith.constant 0 : i32
    return %c0_i32, %c0_i32_0 : i32, i32
  }
  func.func @transform_16(%arg0: i32) -> (i32, i32) {
    %c0_i32 = arith.constant 0 : i32
    %c0_i32_0 = arith.constant 0 : i32
    %c0_i32_1 = arith.constant 0 : i32
    return %c0_i32, %c0_i32_0 : i32, i32
  }
  func.func @transform_17(%arg0: i32) -> (i32, i32) {
    %c0_i32 = arith.constant 0 : i32
    %c0_i32_0 = arith.constant 0 : i32
    %c0_i32_1 = arith.constant 0 : i32
    return %c0_i32, %c0_i32_0 : i32, i32
  }
  func.func @transform_18(%arg0: i32) -> (i32, i32) {
    %c0_i32 = arith.constant 0 : i32
    %c0_i32_0 = arith.constant 0 : i32
    %c0_i32_1 = arith.constant 0 : i32
    return %c0_i32, %c0_i32_0 : i32, i32
  }
  func.func @transform_19(%arg0: i32) -> (i32, i32) {
    %c0_i32 = arith.constant 0 : i32
    %c0_i32_0 = arith.constant 0 : i32
    %c0_i32_1 = arith.constant 0 : i32
    return %c0_i32, %c0_i32_0 : i32, i32
  }
  func.func @transform_20(%arg0: i32) -> (i32, i32) {
    %c0_i32 = arith.constant 0 : i32
    %c0_i32_0 = arith.constant 0 : i32
    %c0_i32_1 = arith.constant 0 : i32
    return %c0_i32, %c0_i32_0 : i32, i32
  }
  func.func @transform_21(%arg0: i32) -> (i32, i32, i32) {
    %c0_i32 = arith.constant 0 : i32
    %c0_i32_0 = arith.constant 0 : i32
    %c0_i32_1 = arith.constant 0 : i32
    return %arg0, %c0_i32, %c0_i32_0 : i32, i32, i32
  }
}

</mosaic_0001>

<bundles_post_ra>
// kernel: transformer_scratch_forward.9
= control target key start
LH: loop header
LB: loop body
LE: loop exit
PB: predicated region body
PF: predicated region fallthrough
CT: control target
= control target key end

     0   :  { %8 = vsyncpa [#allocation3], 0  ;;  %s574_s0 = inlined_call_operand.vmem [shape: f32[2,8,32], index: 0, kind: input, shape index: {}]   ;;  %s575_s1 = inlined_call_operand.vmem [shape: bf16[32,128], index: 1, kind: input, shape index: {}]   ;;  %s576_s2 = inlined_call_operand.vmem [shape: f32[1,128], index: 2, kind: input, shape index: {}]   ;;  %s577_s3 = inlined_call_operand.hbm [shape: f32[2,8,128], index: 3, kind: output, shape index: {}]  }
   0x1   :  { %10 = vsyncpa [#allocation3 + $0x1], 0  ;;  %s465_s12 = smov 0   ;;  %s467_s13 = smov 0  }
   0x2   :  { %s469_s14 = smov 0   ;;  %s471_s15 = smov 0  }
   0x3 LB: > { %s486_s16 = sadd.s32 4294967295, %s440_s15   ;;  %s310_s17 = sadd.s32 4294967294, %s440_s15   ;;  %s440_s15 = sphi %s471_s15, %s583_s15   ;;  %s436_s14 = sphi %s469_s14, %s582_s14   ;;  %s432_s13 = sphi %s467_s13, %s581_s13   ;;  %s428_s12 = sphi %s465_s12, %s580_s12  }
   0x4   : > { %s490_s18 = sadd.s32 1, %s440_s15   ;;  %s91_s19 = sadd.s32 1, %s436_s14 }
   0x5   : > { %s88_s20 = ssub.s32 %s440_s15, %s490_s18  ;;  %p101_p0 = scmp.ne.s32.totalorder %s436_s14, %s432_s13 }
   0x6   : > { %p89_p1 = scmp.eq.s32.totalorder %s88_s20, 0  ;;  %p102_p2 = scmp.eq.s32.totalorder %s486_s16, 1 }
   0x7   : > { %p107_p3 = scmp.ne.s32.totalorder %s432_s13, %s428_s12  ;;  %p108_p4 = scmp.eq.s32.totalorder %s310_s17, 1 }
   0x8   : > { %s501_s21 = scalar_select %p89_p1, %s436_s14, %s91_s19  }
   0x9   : > { %p503_p5 = por %p102_p2, %p101_p0  ;;  %p507_p6 = por %p108_p4, %p107_p3 }
   0xa   : > { %p313_p7 = scmp.ge.s32.totalorder %s440_s15, 1  ;;  %p139_p8 = scmp.lt.s32.totalorder %s440_s15, 3 }
   0xc   : > { %p140_p9 = pnand %p313_p7, %p139_p8 }
   0xd   : > { %v376_v0 = vld [vmem:[%s575_s1] sm:$0xff] (!%p140_p9)   ;;  %v442_v1 = vmov (!%p140_p9), 0.0   ;;  %v377_v2 = vld [vmem:[%s575_s1 + $0x8] sm:$0xff] (!%p140_p9)   ;;  %vm443_vm0 = vmmov (!%p140_p9), 0   ;;  %p162_p10 = scmp.lt.s32.totalorder (!%p140_p9), %s486_s16, 1  ;;  %vm192_vm1 = vcmask (!%p140_p9), 261120  }
   0xe   : > { %143 = sbr.rel (%p140_p9) target bundleno = 256 (0x100), region = 32  ;;  %327 = vmatprep.subr.bf16.mxu0 (!%p140_p9), %v442_v1  ;;  %331 = vmatprep.mubr.msk.bf16.mxu0 (!%p140_p9), %vm443_vm0, %v442_v1  ;;  %s159_s6 = sand.u32 (!%p140_p9), 1, %s432_s13   ;;  %v316_v5 = vld [vmem:[%s576_s2] ss:$0 sm:$0xff] (!%p140_p9) }
   0xf   : > { %328 = vmatpush3.bf16.msra.mxu0 (!%p140_p9), %v376_v0  ;;  %s314_s7 = sshll.u32 (!%p140_p9), %s159_s6, 3  ;;  %s321_s10 = sshll.u32 (!%p140_p9), %s486_s16, 7 }
  0x10   : > { %329 = vmatprep.subr.bf16.mxu0 (!%p140_p9), %v442_v1  ;;  %s161_s11 = scalar_lea.vmem (!%p140_p9), [#allocation2], %s314_s7  ;;  %s532_s24 = scalar_lea.hbm (!%p140_p9), %s577_s3, %s321_s10 }
  0x11   : > { %s251_s17 = sshll.u32 (!%p140_p9), %s161_s11, 4  ;;  %s238_s25 = scalar_lea.sflag (!%p140_p9), [#allocation3], %s159_s6  ;;  %s534_s17 = int_to_ptr.vmem [resolvable:$true] %s251_s17 }
  0x12   : > { %s444_s26 = smov (!%p140_p9), [#allocation2]  }
  0x13   : > { %330 = vmatpush3.bf16.msra.mxu0 (!%p140_p9), %v377_v2  ;;  %s382_s27 = sshll.u32 (!%p140_p9), %s444_s26, 4  ;;  %s383_s27 = int_to_ptr.vmem [resolvable:$false] %s382_s27 }
  0x14   : > { %p385_p0 = scmp.lt.s32.totalorder (!%p140_p9), %s534_s17, %s383_s27 }
  0x15   : > { %s163_s28 = scalar_select %p162_p10, %s486_s16, 1 }
  0x16   : > { %s378_s16 = scalar_lea.vmem %s534_s17, 128 }
  0x17   : > { %s315_s29 = sshll.u32 %s163_s28, 3  ;;  %p379_p11 = scmp.ne.s32.totalorder %s534_s17, %s378_s16 }
  0x18   : > { %s165_s5 = scalar_lea.vmem %s574_s0, %s315_s29  ;;  %s384_s28 = scalar_lea.vmem %s383_s27, 256 }
  0x19   : > { %v167_v3 = vld [vmem:[%s165_s5] sm:$0xff]  ;;  %p380_p12 = pnand %p379_p11, %p503_p5  ;;  %p386_p1 = scmp.lt.s32.totalorder %s384_s28, %s378_s16 }
  0x1a   : > { %v168_v4 = vpack.c.bf16 %v167_v3, %v167_v3 }
  0x1b   : > { %p381_p13 = pneg %p380_p12  ;;  %p387_p2 = por %p386_p1, %p385_p0 }
  0x1c   : > { %332 = vmatmul.mubr.msk.bf16.vlgmr.msra.gmra.mrb[0].mxu0 %vm192_vm1, %v168_v4 }
  0x1d   : > { %p388_p3 = pnand %p387_p2, %p381_p13 }
  0xef   : > { %v230_v6 = vpop.f32.mrb[0].mxu0 }
  0xf0   : > { %v231_v7 = vadd.f32 %v316_v5, %v230_v6  ;;  %v333_v8 = vpop.f32.mrb[1].mxu0 }
  0xf1   : > { %v233_v9 = vpop.f32.mrb[2].mxu0 }
  0xf2   : > { %236 = vst [vmem:[%s161_s11] sm:$0xff] %v231_v7  ;;  %v334_v10 = vpop.f32.mrb[3].mxu0 }
  0xf3   : > { %391 = shalt.err (!%p388_p3)
}
  0xf4   : > { %s392_s29 = scalar_lea.hbm %s532_s24, 128  ;;  %s396_s5 = scalar_lea.hbm %s577_s3, 256 }
  0xf5   : > { %p393_p4 = scmp.ne.s32.totalorder %s532_s24, %s392_s29  ;;  %p397_p9 = scmp.lt.u32.totalorder %s532_s24, %s577_s3 }
  0xf6   : > { %p398_p10 = scmp.lt.u32.totalorder %s396_s5, %s392_s29  ;;  %p400_p12 = scmp.lt.u32.totalorder %s392_s29, %s532_s24 }
  0xf7   : > { %p394_p7 = pnand %p393_p4, %p503_p5 }
  0xf8   : > { %p399_p11 = por %p398_p10, %p397_p9 }
  0xf9   : > { %p395_p8 = pneg %p394_p7 }
  0xfa   : > { %p401_p13 = por %p400_p12, %p399_p11 }
  0xfc   : > { %p402_p0 = pnand %p401_p13, %p395_p8 }
  0xfe   : > { %405 = shalt.err (!%p402_p0)
}
  0xff   : > { %335 = dma.vmem_to_hbm [thread:$0]  (%p503_p5), %s534_s17, 128, %s532_s24, %s238_s25  }
 0x100 PF: > { %p341_p1 = scmp.ge.s32.totalorder %s440_s15, 2  ;;  %s263_s8 = sand.u32 1, %s428_s12  }
 0x101   : > { %s264_s9 = scalar_lea.sflag [#allocation3], %s263_s8 }
 0x102   : > { %p338_p2 = pnand %p341_p1, %p507_p6 }
 0x104   : > { %423 = dma.done.wait (!%p338_p2), %s264_s9, 128  }
 0x105   : > { %425 = vsyncadd (!%p338_p2), %s264_s9, 4294967168  ;;  %p13_p3 = scmp.ge.s32.totalorder %s490_s18, 4   ;;  %s580_s12 = smov %s432_s13 }
 0x106   : > { %s581_s13 = smov %s436_s14  ;;  %s582_s14 = smov %s501_s21 }
 0x107   : > { %s583_s15 = smov %s490_s18  ;;  %15 = sbr.rel (!%p13_p3) target bundleno = 3 (0x3), region = 67 }
 0x10e   :  { %269 = vsyncpa [#allocation3], 1 }
 0x10f   :  { %271 = vsyncpa [#allocation3 + $0x1], 1 }

// kernel: transformer_scratch_forward.5
= control target key start
LH: loop header
LB: loop body
LE: loop exit
PB: predicated region body
PF: predicated region fallthrough
CT: control target
= control target key end

     0   :  { %s1480_s29 = smov 0   ;;  %s1650_s0 = inlined_call_operand.vmem [shape: f32[2,8,32], index: 0, kind: input, shape index: {}]   ;;  %s1651_s1 = inlined_call_operand.vmem [shape: f32[2,1,32], index: 1, kind: input, shape index: {}]   ;;  %s1652_s2 = inlined_call_operand.vmem [shape: f32[32,32], index: 2, kind: input, shape index: {}]   ;;  %s1653_s3 = inlined_call_operand.vmem [shape: bf16[8,24], index: 3, kind: input, shape index: {}]   ;;  %s1654_s4 = inlined_call_operand.vmem [shape: bf16[4,8,32], index: 4, kind: input, shape index: {}]   ;;  %s1655_s5 = inlined_call_operand.vmem [shape: f32[1,32], index: 5, kind: input, shape index: {}]   ;;  %s1656_s6 = inlined_call_operand.vmem [shape: f32[1,32], index: 6, kind: input, shape index: {}]   ;;  %s1657_s7 = inlined_call_operand.vmem [shape: f32[1,32], index: 7, kind: input, shape index: {}]   ;;  %s1658_s8 = inlined_call_operand.vmem [shape: bf16[32,64], index: 8, kind: input, shape index: {}]   ;;  %s1659_s9 = inlined_call_operand.vmem [shape: f32[1,64], index: 9, kind: input, shape index: {}]   ;;  %s1660_s10 = inlined_call_operand.vmem [shape: bf16[64,32], index: 10, kind: input, shape index: {}]   ;;  %s1661_s11 = inlined_call_operand.vmem [shape: f32[1,32], index: 11, kind: input, shape index: {}]   ;;  %s1662_s12 = inlined_call_operand.vmem [shape: f32[1,32], index: 12, kind: input, shape index: {}]   ;;  %s1663_s13 = inlined_call_operand.vmem [shape: f32[1,32], index: 13, kind: input, shape index: {}]   ;;  %s1664_s14 = inlined_call_operand.vmem [shape: f32[2,8,32], index: 14, kind: output, shape index: {}]  }
   0x1 LB: > { %s1222_s30 = sadd.s32 4294967295, %s1398_s29   ;;  %p1226_p0 = scmp.ge.s32.totalorder %s1398_s29, 1  ;;  %s1398_s29 = sphi %s1480_s29, %s24_s29  }
   0x2   : > { %p419_p1 = scmp.lt.s32.totalorder %s1398_s29, 3 }
   0x4   : > { %p420_p2 = pnand %p1226_p0, %p419_p1 }
   0x5   : > { %p466_p3 = scmp.lt.s32.totalorder (!%p420_p2), %s1222_s30, 1  ;;  %v494_v0 = vld [vmem:[%s1653_s3] sm:$0xf] (!%p420_p2)  ;;  %vm514_vm0 = vcmask (!%p420_p2), 1043456   ;;  %s1400_s21 = smov (!%p420_p2), 120   ;;  %vm507_vm1 = vcmask (!%p420_p2), 64512  }
   0x6   : > { %423 = sbr.rel (%p420_p2) target bundleno = 2544 (0x9f0), region = 76  ;;  %1350 = vmatprep.subr.msk.bf16.mxu0 (!%p420_p2), %vm514_vm0, %v494_v0  ;;  %v516_v1 = vsel (!%p420_p2), %vm514_vm0, %v494_v0, 0  ;;  %s1401_s22 = smov (!%p420_p2), 104   ;;  %v479_v19 = vld [vmem:[%s1652_s2] sm:$0xff] (!%p420_p2)  ;;  %v482_v20 = vld [vmem:[%s1652_s2 + $0x18] sm:$0xff] (!%p420_p2)  ;;  %v480_v21 = vld [vmem:[%s1652_s2 + $0x8] sm:$0xff] (!%p420_p2) }
   0x7   : > { %1285 = vmatpush3.bf16.msra.mxu0 (!%p420_p2), %v516_v1  ;;  %s1402_s23 = smov (!%p420_p2), 112   ;;  %v481_v23 = vld [vmem:[%s1652_s2 + $0x10] sm:$0xff] (!%p420_p2)  ;;  %vm636_vm2 = vcmask (!%p420_p2), 261120   ;;  %v1403_v59 = vmov (!%p420_p2), 0.0   ;;  %vm1404_vm3 = vmmov (!%p420_p2), 0   ;;  %vm1085_vm4 = vcmask (!%p420_p2), 523264  }
   0xd   : > { %s1666_s30 = smov (!%p466_p3, %s1222_s30), 1 }
   0xe   : > { %s1227_s17 = sshll.u32 %s1666_s30, 3  ;;  %s472_s26 = scalar_lea.vmem %s1651_s1, %s1666_s30 }
   0xf   : > { %s469_s20 = scalar_lea.vmem %s1650_s0, %s1227_s17  ;;  %v1229_v18 = vld [vmem:[%s472_s26] ss:$0 sm:$0xff]  ;;  %s476_s19 = scalar_lea.vmem %s1664_s14, %s1227_s17 }
  0x10   : > { %v1501_v2 = vld [vmem:[%s469_s20] sm:$0xff]  ;;  %v490_v22 = vadd.f32 %v1229_v18, %v479_v19  ;;  %v493_v25 = vadd.f32 %v1229_v18, %v482_v20  ;;  %v491_v26 = vadd.f32 %v1229_v18, %v480_v21  ;;  %v492_v28 = vadd.f32 %v1229_v18, %v481_v23 }
  0x11   : > { %496 = vrot.lane.b32.xlu0 %v1501_v2, %s1400_s21  ;;  %502 = vrot.lane.b32.xlu1 %v1501_v2, %s1401_s22  ;;  %v744_v19 = vld [vmem:[%s1654_s4] sm:$0xf] }
  0x15   : > { %499 = vrot.lane.b32.xlu0 %v1501_v2, %s1402_s23 }
  0x83   : > { %v497_v3 = vpop.permute.xlu0 %496  ;;  %v503_v5 = vpop.permute.xlu1 %502 }
  0x84   : > { %v505_v4 = vpack.c.bf16 %v497_v3, %v1501_v2 }
  0x86   : > { %1286 = vmatprep.mubr.msk.bf16.mxu0 %vm507_vm1, %v505_v4 }
  0x87   : > { %v500_v6 = vpop.permute.xlu0 %499 }
  0x88   : > { %v506_v7 = vpack.c.bf16 %v503_v5, %v500_v6 }
  0x8a   : > { %1287 = vmatmul.mubr.msk.bf16.vlgmr.msra.gmra.mrb[0].mxu0 %vm507_vm1, %v506_v7 }
 0x15d   : > { %v1288_v8 = vpop.f32.mrb[0].mxu0 }
 0x15e   : > { %v552_v9 = vpop.f32.mrb[1].mxu0 }
 0x15f   : > { %v1289_v10 = vpop.f32.mrb[2].mxu0 }
 0x160   : > { %v1510_v11 = vpack.c.bf16 %v1289_v10, %v1288_v8  ;;  %v555_v12 = vpop.f32.mrb[3].mxu0  ;;  %v745_v10 = vld [vmem:[%s1654_s4 + $0x4] sm:$0xf] }
 0x161   : > { %v1512_v13 = vpack.c.bf16 %v555_v12, %v552_v9 }
 0x162   : > { %573 = vrot.lane.b32.xlu0 %v1510_v11, %s1400_s21 }
 0x163   : > { %571 = vrot.lane.b32.xlu1 %v1512_v13, %s1400_s21  ;;  %1294 = vmatprep.mubr.msk.bf16.mxu1 %vm507_vm1, %v1512_v13 }
 0x1d4   : > { %v574_v16 = vpop.permute.xlu0 %573 }
 0x1d5   : > { %v572_v14 = vpop.permute.xlu1 %571  ;;  %v585_v17 = vsel %vm507_vm1, %v574_v16, 0 }
 0x1d6   : > { %1351 = vmatprep.subr.msk.bf16.mxu1 %vm507_vm1, %v572_v14  ;;  %v582_v15 = vsel %vm507_vm1, %v572_v14, 0  ;;  %v755_v14 = vsel %vm514_vm0, %v745_v10, 0  ;;  %v1243_v10 = vld [vmem:[%s1659_s9] ss:$0 sm:$0xff] }
 0x1d7   : > { %1291 = vmatpush3.bf16.xpose.msra.mxu1 %v582_v15  ;;  %v747_v15 = vld [vmem:[%s1654_s4 + $0xc] sm:$0xf] }
 0x1d8   : > { %1352 = vmatprep.subr.msk.bf16.mxu1 %vm507_vm1, %v574_v16  ;;  %v896_v16 = vsel %vm514_vm0, %v747_v15, 0 }
 0x1df   : > { %1293 = vmatpush3.bf16.xpose.msra.mxu1 %v585_v17 }
 0x1e0   : > { %1324 = vmatprep.subr.bf16.mxu1 %v1403_v59 }
 0x1e6   : > { %1295 = vmatmul.mubr.msk.bf16.vlgmr.msra.gmra.mrb[0].mxu1 %vm507_vm1, %v1510_v11 }
 0x1e7   : > { %1325 = vmatpush3.bf16.msra.mxu1 %v896_v16  ;;  %1326 = vmatprep.mubr.msk.bf16.mxu1 %vm1404_vm3, %v1403_v59 }
 0x1e8   : > { %1338 = vmatprep.subr.bf16.mxu1 %v1403_v59 }
 0x2b9   : > { %v1296_v24 = vpop.f32.mrb[0].mxu1 }
 0x2ba   : > { %v621_v27 = vpop.f32.mrb[1].mxu1  ;;  %v630_v35 = vadd.f32 %v1296_v24, %v492_v28  ;;  %v801_v24 = vsel %vm514_vm0, %v744_v19, 0 }
 0x2bb   : > { %v622_v29 = vadd.f32 %v621_v27, %v490_v22  ;;  %v1297_v30 = vpop.f32.mrb[2].mxu1 }
 0x2bc   : > { %v624_v31 = vpop.f32.mrb[3].mxu1  ;;  %v633_v32 = vadd.f32 %v1297_v30, %v493_v25  ;;  %v643_v38 = vsel %vm636_vm2, %v630_v35, -inf  ;;  %v746_v25 = vld [vmem:[%s1654_s4 + $0x8] sm:$0xf] }
 0x2bd   : > { %v625_v33 = vadd.f32 %v624_v31, %v491_v26  ;;  %v637_v34 = vsel %vm636_vm2, %v622_v29, -inf  ;;  %v848_v27 = vsel %vm514_vm0, %v746_v25, 0 }
 0x2be   : > { %638 = vmax.xlane.f32.xlu1 %v637_v34  ;;  %v646_v37 = vsel %vm636_vm2, %v633_v32, -inf }
 0x2bf   : > { %v640_v36 = vsel %vm636_vm2, %v625_v33, -inf }
 0x2c0   : > { %641 = vmax.xlane.f32.xlu0 %v640_v36 }
 0x2c2   : > { %647 = vmax.xlane.f32.xlu1 %v646_v37 }
 0x2c4   : > { %644 = vmax.xlane.f32.xlu0 %v643_v38 }
 0x34b   : > { %v639_v39 = vpop.xlane.xlu1 %638 }
 0x34c   : > { %v649_v43 = vsub.f32 %v622_v29, %v639_v39 }
 0x34d   : > { %v642_v40 = vpop.xlane.xlu0 %641 }
 0x34e   : > { %v650_v41 = vsub.f32 %v625_v33, %v642_v40  ;;  %v653_v49 = vmul.f32 1.442695, %v649_v43 }
 0x34f   : > { %v648_v42 = vpop.xlane.xlu1 %647 }
 0x350   : > { %v652_v44 = vsub.f32 %v633_v32, %v648_v42  ;;  %v655_v45 = vmul.f32 1.442695, %v650_v41 }
 0x351   : > { %v645_v46 = vpop.xlane.xlu0 %644 }
 0x352   : > { %v659_v47 = vmul.f32 1.442695, %v652_v44  ;;  %v651_v48 = vsub.f32 %v630_v35, %v645_v46  ;;  %v1240_v46 = vld [vmem:[%s1655_s5] ss:$0 sm:$0xff] }
 0x354   : > { %1372 = vpow2.f32 %v659_v47  ;;  %v657_v50 = vmul.f32 1.442695, %v651_v48 }
 0x355   : > { %1374 = vpow2.f32 %v655_v45 }
 0x356   : > { %1376 = vpow2.f32 %v657_v50 }
 0x357   : > { %1378 = vpow2.f32 %v653_v49 }
 0x35e   : > { %v1373_v51 = vpop.eup %1372 }
 0x35f   : > { %v1375_v52 = vpop.eup %1374  ;;  %v670_v53 = vsel %vm636_vm2, %v1373_v51, 0.0 }
 0x360   : > { %v1377_v54 = vpop.eup %1376  ;;  %671 = vadd.xlane.f32.xlu1 %v670_v53  ;;  %v664_v57 = vsel %vm636_vm2, %v1375_v52, 0.0 }
 0x361   : > { %v667_v55 = vsel %vm636_vm2, %v1377_v54, 0.0  ;;  %v1379_v56 = vpop.eup %1378 }
 0x362   : > { %668 = vadd.xlane.f32.xlu0 %v667_v55  ;;  %v661_v58 = vsel %vm636_vm2, %v1379_v56, 0.0 }
 0x364   : > { %665 = vadd.xlane.f32.xlu1 %v664_v57  ;;  %v1366_v57 = vld [vmem:[%s1658_s8] sm:$0xff]  }
 0x366   : > { %662 = vadd.xlane.f32.xlu0 %v661_v58  ;;  %v1368_v58 = vld [vmem:[%s1660_s10] sm:$0xff]  }
 0x375   : > { %685 = vrot.lane.b32.xlu1 %v1510_v11, %s1402_s23 }
 0x37c   : > { %683 = vrot.lane.b32.xlu0 %v1512_v13, %s1402_s23 }
 0x3ed   : > { %v672_v60 = vpop.xlane.xlu1 %671 }
 0x3ef   : > { %v669_v61 = vpop.xlane.xlu0 %668 }
 0x3f0   : > { %1380 = vrcp.f32 %v669_v61 }
 0x3f1   : > { %v666_v62 = vpop.xlane.xlu1 %665 }
 0x3f2   : > { %1382 = vrcp.f32 %v666_v62 }
 0x3f3   : > { %1384 = vrcp.f32 %v672_v60  ;;  %v663_v63 = vpop.xlane.xlu0 %662  ;;  %v1369_v60 = vld [vmem:[%s1660_s10 + $0x8] sm:$0xff]  }
 0x3f4   : > { %1386 = vrcp.f32 %v663_v63 }
 0x3f5   : > { %v686_v1 = vpop.permute.xlu1 %685 }
 0x3f7   : > { %v684_v0 = vpop.permute.xlu0 %683 }
 0x3f8   : > { %1298 = vmatprep.subr.bf16.mxu0 %v684_v0 }
 0x3f9   : > { %1299 = vmatpush3.bf16.msra.mxu0 %v684_v0 }
 0x3fa   : > { %1300 = vmatprep.subr.bf16.mxu0 %v686_v1  ;;  %v1381_v3 = vpop.eup %1380 }
 0x3fb   : > { %v679_v7 = vmul.f32 %v1381_v3, %v1377_v54 }
 0x3fc   : > { %v1383_v4 = vpop.eup %1382 }
 0x3fd   : > { %v1385_v5 = vpop.eup %1384  ;;  %1301 = vmatpush3.bf16.msra.mxu0 %v686_v1  ;;  %v678_v9 = vmul.f32 %v1383_v4, %v1375_v52  ;;  %v1241_v1 = vld [vmem:[%s1656_s6] ss:$0 sm:$0xff] }
 0x3fe   : > { %v1387_v6 = vpop.eup %1386  ;;  %1306 = vmatprep.subr.bf16.mxu0 %v1403_v59  ;;  %v680_v11 = vmul.f32 %v1385_v5, %v1373_v51  ;;  %v1242_v4 = vld [vmem:[%s1657_s7] ss:$0 sm:$0xff] }
 0x3ff   : > { %v677_v8 = vmul.f32 %v1387_v6, %v1379_v56 }
 0x400   : > { %v682_v13 = vpack.c.bf16 %v680_v11, %v679_v7 }
 0x401   : > { %v681_v12 = vpack.c.bf16 %v678_v9, %v677_v8  ;;  %v1370_v8 = vld [vmem:[%s1660_s10 + $0x10] sm:$0xff]   ;;  %v1371_v9 = vld [vmem:[%s1660_s10 + $0x18] sm:$0xff]  }
 0x403   : > { %1302 = vmatprep.mubr.msk.bf16.mxu0 %vm636_vm2, %v681_v12 }
 0x404   : > { %1303 = vmatmul.mubr.msk.bf16.vlgmr.msra.gmra.mrb[4].mxu0 %vm636_vm2, %v682_v13 }
 0x405   : > { %1307 = vmatpush3.bf16.msra.mxu0 %v755_v14  ;;  %1308 = vmatprep.mubr.msk.bf16.mxu0 %vm1404_vm3, %v1403_v59 }
 0x406   : > { %1312 = vmatprep.subr.bf16.mxu0 %v1403_v59 }
 0x4d7   : > { %v1304_v17 = vpop.f32.mrb[4].mxu0 }
 0x4d8   : > { %v729_v18 = vpop.f32.mrb[5].mxu0  ;;  %v843_v28 = vpack.c.bf16 %v1304_v17, %v1304_v17 }
 0x4d9   : > { %v1305_v20 = vpop.f32.mrb[6].mxu0  ;;  %v749_v26 = vpack.c.bf16 %v729_v18, %v729_v18 }
 0x4da   : > { %v891_v21 = vpack.c.bf16 %v1305_v20, %v1305_v20  ;;  %v732_v22 = vpop.f32.mrb[7].mxu0 }
 0x4db   : > { %v750_v23 = vpack.c.bf16 %v732_v22, %v732_v22 }
 0x4dc   : > { %1327 = vmatmul.mubr.msk.bf16.vlgmr.msra.gmra.mrb[4].mxu1 %vm507_vm1, %v891_v21 }
 0x4dd   : > { %1309 = vmatmul.mubr.msk.bf16.vlgmr.msra.gmra.mrb[8].mxu0 %vm507_vm1, %v750_v23  ;;  %1346 = vmatprep.mubr.msk.bf16.mxu1 %vm1404_vm3, %v1403_v59 }
 0x4de   : > { %1313 = vmatpush3.bf16.msra.mxu0 %v801_v24  ;;  %1314 = vmatprep.mubr.msk.bf16.mxu0 %vm1404_vm3, %v1403_v59 }
 0x4df   : > { %1318 = vmatprep.subr.bf16.mxu0 %v1403_v59  ;;  %1339 = vmatpush3.bf16.msra.mxu1 %v1368_v58 }
 0x4e0   : > { %1340 = vmatprep.subr.bf16.mxu1 %v1403_v59 }
 0x4e3   : > { %1341 = vmatpush3.bf16.msra.mxu1 %v1369_v60 }
 0x4e4   : > { %1342 = vmatprep.subr.bf16.mxu1 %v1403_v59 }
 0x4e5   : > { %1315 = vmatmul.mubr.msk.bf16.vlgmr.msra.gmra.mrb[12].mxu0 %vm507_vm1, %v749_v26 }
 0x4e6   : > { %1319 = vmatpush3.bf16.msra.mxu0 %v848_v27  ;;  %1320 = vmatprep.mubr.msk.bf16.mxu0 %vm1404_vm3, %v1403_v59 }
 0x4e7   : > { %1330 = vmatprep.subr.bf16.mxu0 %v1403_v59  ;;  %1343 = vmatpush3.bf16.msra.mxu1 %v1370_v8 }
 0x4e8   : > { %1344 = vmatprep.subr.bf16.mxu1 %v1403_v59 }
 0x4eb   : > { %1345 = vmatpush3.bf16.msra.mxu1 %v1371_v9 }
 0x4ed   : > { %1321 = vmatmul.mubr.msk.bf16.vlgmr.msra.gmra.mrb[16].mxu0 %vm507_vm1, %v843_v28 }
 0x4ee   : > { %1334 = vmatprep.mubr.msk.bf16.mxu0 %vm1404_vm3, %v1403_v59  ;;  %1331 = vmatpush3.bf16.msra.mxu0 %v1366_v57 }
 0x4ef   : > { %1332 = vmatprep.subr.bf16.mxu0 %v1403_v59  ;;  %v1247_v59 = vld [vmem:[%s1661_s11] ss:$0 sm:$0xff] }
 0x5af   : > { %v932_v29 = vpop.f32.mrb[4].mxu1 }
 0x5b0   : > { %v791_v30 = vpop.f32.mrb[8].mxu0  ;;  %v1328_v31 = vpop.f32.mrb[5].mxu1 }
 0x5b1   : > { %v1310_v32 = vpop.f32.mrb[9].mxu0  ;;  %v935_v33 = vpop.f32.mrb[6].mxu1 }
 0x5b2   : > { %v794_v34 = vpop.f32.mrb[10].mxu0  ;;  %v1329_v35 = vpop.f32.mrb[7].mxu1 }
 0x5b3   : > { %v1311_v36 = vpop.f32.mrb[11].mxu0  ;;  %v1253_v34 = vld [vmem:[%s1662_s12] ss:$0 sm:$0xff] }
 0x5b4   : > { %v1254_v36 = vld [vmem:[%s1663_s13] ss:$0 sm:$0xff] }
 0x5b8   : > { %v837_v37 = vpop.f32.mrb[12].mxu0 }
 0x5b9   : > { %v838_v38 = vadd.f32 %v837_v37, %v791_v30  ;;  %v1316_v39 = vpop.f32.mrb[13].mxu0 }
 0x5ba   : > { %v840_v40 = vpop.f32.mrb[14].mxu0 }
 0x5bb   : > { %v1317_v41 = vpop.f32.mrb[15].mxu0 }
 0x5c0   : > { %v884_v42 = vpop.f32.mrb[16].mxu0 }
 0x5c1   : > { %v890_v43 = vadd.f32 %v884_v42, %v838_v38  ;;  %v1322_v44 = vpop.f32.mrb[17].mxu0 }
 0x5c2   : > { %v887_v45 = vpop.f32.mrb[18].mxu0 }
 0x5c3   : > { %v938_v47 = vadd.f32 %v932_v29, %v890_v43  ;;  %v1323_v48 = vpop.f32.mrb[19].mxu0 }
 0x5c5   : > { %v945_v49 = vadd.f32 %v1240_v46, %v938_v47 }
 0x5c7   : > { %v946_v50 = vadd.f32 %v945_v49, %v1501_v2  ;;  %v1367_v2 = vld [vmem:[%s1658_s8 + $0x8] sm:$0xff]  }
 0x5c8   : > { %1333 = vmatpush3.bf16.msra.mxu0 %v1367_v2 }
 0x5c9   : > { %v949_v51 = vsel %vm636_vm2, %v946_v50, 0.0 }
 0x5ca   : > { %950 = vadd.xlane.f32.xlu1 %v949_v51 }
 0x657   : > { %v951_v52 = vpop.xlane.xlu1 %950 }
 0x658   : > { %v953_v53 = vmul.f32 0.03125, %v951_v52 }
 0x65a   : > { %v954_v54 = vsub.f32 %v946_v50, %v953_v53 }
 0x65c   : > { %v955_v55 = vmul.f32 %v954_v54, %v954_v54 }
 0x65e   : > { %v956_v56 = vsel %vm636_vm2, %v955_v55, 0.0 }
 0x65f   : > { %957 = vadd.xlane.f32.xlu0 %v956_v56 }
 0x6ec   : > { %v958_v61 = vpop.xlane.xlu0 %957 }
 0x6ed   : > { %v959_v62 = vmul.f32 0.03125, %v958_v61 }
 0x6ef   : > { %v960_v63 = vadd.f32 1e-05, %v959_v62 }
 0x6f1   : > { %1388 = vrsqrt.f32 %v960_v63 }
 0x6fb   : > { %v1389_v0 = vpop.eup %1388 }
 0x6fc   : > { %v962_v3 = vmul.f32 %v1389_v0, %v954_v54 }
 0x6fe   : > { %v969_v5 = vmul.f32 %v1241_v1, %v962_v3 }
 0x700   : > { %v976_v6 = vadd.f32 %v1242_v4, %v969_v5 }
 0x702   : > { %v991_v7 = vpack.c.bf16 %v976_v6, %v976_v6 }
 0x704   : > { %1335 = vmatmul.mubr.msk.bf16.vlgmr.msra.gmra.mrb[20].mxu0 %vm636_vm2, %v991_v7 }
 0x7d7   : > { %v1047_v11 = vpop.f32.mrb[20].mxu0 }
 0x7d8   : > { %v1048_v12 = vadd.f32 %v1243_v10, %v1047_v11  ;;  %v1336_v13 = vpop.f32.mrb[21].mxu0 }
 0x7d9   : > { %v1050_v14 = vpop.f32.mrb[22].mxu0 }
 0x7da   : > { %v1053_v15 = vmax.f32 %v1048_v12, 0.0  ;;  %v1337_v16 = vpop.f32.mrb[23].mxu0 }
 0x7dc   : > { %v1054_v17 = vpack.c.bf16 %v1053_v15, %v1053_v15 }
 0x7de   : > { %1347 = vmatmul.mubr.msk.bf16.vlgmr.msra.gmra.mrb[8].mxu1 %vm1085_vm4, %v1054_v17 }
 0x8b1   : > { %v1123_v18 = vpop.f32.mrb[8].mxu1 }
 0x8b2   : > { %v1124_v19 = vadd.f32 %v1247_v59, %v1123_v18  ;;  %v1348_v20 = vpop.f32.mrb[9].mxu1 }
 0x8b3   : > { %v1126_v21 = vpop.f32.mrb[10].mxu1 }
 0x8b4   : > { %v1349_v22 = vpop.f32.mrb[11].mxu1  ;;  %v1129_v23 = vadd.f32 %v1124_v19, %v976_v6 }
 0x8b6   : > { %v1132_v24 = vsel %vm636_vm2, %v1129_v23, 0.0 }
 0x8b7   : > { %1133 = vadd.xlane.f32.xlu0 %v1132_v24 }
 0x944   : > { %v1134_v25 = vpop.xlane.xlu0 %1133 }
 0x945   : > { %v1135_v26 = vmul.f32 0.03125, %v1134_v25 }
 0x947   : > { %v1136_v27 = vsub.f32 %v1129_v23, %v1135_v26 }
 0x949   : > { %v1137_v28 = vmul.f32 %v1136_v27, %v1136_v27 }
 0x94b   : > { %v1138_v29 = vsel %vm636_vm2, %v1137_v28, 0.0 }
 0x94c   : > { %1139 = vadd.xlane.f32.xlu1 %v1138_v29 }
 0x9d9   : > { %v1140_v30 = vpop.xlane.xlu1 %1139 }
 0x9da   : > { %v1141_v31 = vmul.f32 0.03125, %v1140_v30 }
 0x9dc   : > { %v1142_v32 = vadd.f32 1e-05, %v1141_v31 }
 0x9de   : > { %1390 = vrsqrt.f32 %v1142_v32 }
 0x9e8   : > { %v1391_v33 = vpop.eup %1390 }
 0x9e9   : > { %v1144_v35 = vmul.f32 %v1391_v33, %v1136_v27 }
 0x9eb   : > { %v1151_v37 = vmul.f32 %v1253_v34, %v1144_v35 }
 0x9ed   : > { %v1158_v38 = vadd.f32 %v1254_v36, %v1151_v37 }
 0x9ef   : > { %1159 = vst.msk [vmem:[%s476_s19] sm:$0xff] %vm636_vm2, %v1158_v38 }
 0x9f0 PF: > { %s24_s29 = sadd.s32 1, %s1398_s29  }
 0x9f1   : > { %p21_p4 = scmp.ge.s32.totalorder %s24_s29, 4  }
 0x9f3   :  { %23 = sbr.rel (!%p21_p4) target bundleno = 1 (0x1), region = 109 }

// kernel: transformer_scratch_forward.7
= control target key start
LH: loop header
LB: loop body
LE: loop exit
PB: predicated region body
PF: predicated region fallthrough
CT: control target
= control target key end

     0   :  { %s2677_s0 = inlined_call_operand.vmem [shape: f32[2,8,32], index: 0, kind: input, shape index: {}]   ;;  %s2678_s1 = inlined_call_operand.vmem [shape: f32[2,8,32], index: 1, kind: input, shape index: {}]   ;;  %s2679_s2 = inlined_call_operand.vmem [shape: f32[2,1,32], index: 2, kind: input, shape index: {}]   ;;  %s2680_s3 = inlined_call_operand.vmem [shape: f32[32,32], index: 3, kind: input, shape index: {}]   ;;  %s2681_s4 = inlined_call_operand.vmem [shape: f32[32,32], index: 4, kind: input, shape index: {}]   ;;  %s2682_s5 = inlined_call_operand.vmem [shape: bf16[8,24], index: 5, kind: input, shape index: {}]   ;;  %s2683_s6 = inlined_call_operand.vmem [shape: bf16[4,8,32], index: 6, kind: input, shape index: {}]   ;;  %s2684_s7 = inlined_call_operand.vmem [shape: f32[1,32], index: 7, kind: input, shape index: {}]   ;;  %s2685_s8 = inlined_call_operand.vmem [shape: f32[1,32], index: 8, kind: input, shape index: {}]   ;;  %s2686_s9 = inlined_call_operand.vmem [shape: f32[1,32], index: 9, kind: input, shape index: {}]   ;;  %s2687_s10 = inlined_call_operand.vmem [shape: bf16[8,24], index: 10, kind: input, shape index: {}]   ;;  %s2688_s11 = inlined_call_operand.vmem [shape: bf16[4,8,32], index: 11, kind: input, shape index: {}]   ;;  %s2689_s12 = inlined_call_operand.vmem [shape: f32[1,32], index: 12, kind: input, shape index: {}]   ;;  %s2690_s13 = inlined_call_operand.vmem [shape: f32[1,32], index: 13, kind: input, shape index: {}]   ;;  %s2691_s14 = inlined_call_operand.vmem [shape: f32[1,32], index: 14, kind: input, shape index: {}]   ;;  %s2692_s15 = inlined_call_operand.vmem [shape: bf16[32,64], index: 15, kind: input, shape index: {}]   ;;  %s2693_s16 = inlined_call_operand.vmem [shape: f32[1,64], index: 16, kind: input, shape index: {}]   ;;  %s2694_s17 = inlined_call_operand.vmem [shape: bf16[64,32], index: 17, kind: input, shape index: {}]   ;;  %s2695_s18 = inlined_call_operand.vmem [shape: f32[1,32], index: 18, kind: input, shape index: {}]   ;;  %s2696_s19 = inlined_call_operand.vmem [shape: f32[1,32], index: 19, kind: input, shape index: {}]   ;;  %s2697_s20 = inlined_call_operand.vmem [shape: f32[1,32], index: 20, kind: input, shape index: {}]   ;;  %s2698_s21 = inlined_call_operand.vmem [shape: f32[2,8,32], index: 21, kind: output, shape index: {}]  }
   0x1   :  { %2703 = sst [smem:[#allocation2_spill]] %s2677_s0 }
   0x2   :  { %2704 = sst [smem:[#allocation3_spill]] %s2678_s1 }
   0x3   :  { %2705 = sst [smem:[#allocation4_spill]] %s2679_s2  ;;  %s2398_s2 = smov 0  }
   0x4   :  { %2706 = sst [smem:[#allocation5_spill]] %s2680_s3 }
   0x5   :  { %2707 = sst [smem:[#allocation6_spill]] %s2681_s4 }
   0x6   :  { %2708 = sst [smem:[#allocation7_spill]] %s2682_s5 }
   0x7   :  { %2709 = sst [smem:[#allocation8_spill]] %s2683_s6 }
   0x8   :  { %2710 = sst [smem:[#allocation9_spill]] %s2684_s7 }
   0x9 LB: > { %s1993_s25 = sadd.s32 4294967295, %s2281_s2   ;;  %p1997_p0 = scmp.ge.s32.totalorder %s2281_s2, 1  ;;  %s2281_s2 = sphi %s2398_s2, %s31_s2  }
   0xa   : > { %p603_p1 = scmp.lt.s32.totalorder %s2281_s2, 3 }
   0xc   : > { %p604_p2 = pnand %p1997_p0, %p603_p1 }
   0xd   : > { %p668_p3 = scmp.lt.s32.totalorder (!%p604_p2), %s1993_s25, 1  ;;  %s2711_s3 = sld [smem:[#allocation7_spill]] (!%p604_p2)  ;;  %vm710_vm0 = vcmask (!%p604_p2), 1043456   ;;  %vm703_vm1 = vcmask (!%p604_p2), 64512   ;;  %vm832_vm2 = vcmask (!%p604_p2), 261120   ;;  %v2286_v54 = vmov (!%p604_p2), 0.0  }
   0xe   : > { %607 = sbr.rel (%p604_p2) target bundleno = 4183 (0x1057), region = 104  ;;  %s2712_s4 = sld [smem:[#allocation2_spill]] (!%p604_p2)  ;;  %vm2287_vm3 = vmmov (!%p604_p2), 0   ;;  %vm1844_vm4 = vcmask (!%p604_p2), 523264  }
   0xf   : > { %s2283_s5 = smov (!%p604_p2), 120   ;;  %s2284_s22 = smov (!%p604_p2), 104  }
  0x10   : > { %s2701_s23 = smov (!%p604_p2), 112   ;;  %s2713_s26 = sld [smem:[#allocation5_spill]] (!%p604_p2) }
  0x11   : > { %s2714_s6 = sld [smem:[#allocation8_spill]] (!%p604_p2)  ;;  %s2715_s7 = sld [smem:[#allocation9_spill]] (!%p604_p2) }
  0x12   : > { %s2716_s29 = sld [smem:[#allocation3_spill]] (!%p604_p2)  ;;  %s2718_s1 = sld [smem:[#allocation6_spill]] (!%p604_p2) }
  0x13   : > { %v686_v0 = vld [vmem:[%s2711_s3] sm:$0xf] (!%p604_p2) }
  0x14   : > { %2211 = vmatprep.subr.msk.bf16.mxu1 (!%p604_p2), %vm710_vm0, %v686_v0  ;;  %v712_v1 = vsel (!%p604_p2), %vm710_vm0, %v686_v0, 0 }
  0x15   : > { %s2721_s25 = smov (!%p668_p3, %s1993_s25), 1  ;;  %2094 = vmatpush3.bf16.msra.mxu1 %v712_v1 }
  0x16   : > { %s2414_s28 = sshll.u32 %s2721_s25, 3  ;;  %v687_v18 = vld [vmem:[%s2713_s26] sm:$0xff]  ;;  %v690_v21 = vld [vmem:[%s2713_s26 + $0x18] sm:$0xff]  ;;  %v688_v22 = vld [vmem:[%s2713_s26 + $0x8] sm:$0xff] }
  0x17   : > { %s671_s30 = scalar_lea.vmem %s2712_s4, %s2414_s28  ;;  %v689_v25 = vld [vmem:[%s2713_s26 + $0x10] sm:$0xff]  ;;  %s682_s27 = scalar_lea.vmem %s2698_s21, %s2414_s28 }
  0x18   : > { %v2420_v2 = vld [vmem:[%s671_s30] sm:$0xff]  ;;  %s675_s0 = scalar_lea.vmem %s2716_s29, %s2414_s28  ;;  %s2717_s29 = sld [smem:[#allocation4_spill]] }
  0x19   : > { %692 = vrot.lane.b32.xlu0 %v2420_v2, %s2283_s5  ;;  %698 = vrot.lane.b32.xlu1 %v2420_v2, %s2284_s22 }
  0x1d   : > { %695 = vrot.lane.b32.xlu0 %v2420_v2, %s2701_s23 }
  0x8b   : > { %v693_v3 = vpop.permute.xlu0 %692  ;;  %v699_v5 = vpop.permute.xlu1 %698 }
  0x8c   : > { %v701_v4 = vpack.c.bf16 %v693_v3, %v2420_v2 }
  0x8e   : > { %2095 = vmatprep.mubr.msk.bf16.mxu1 %vm703_vm1, %v701_v4 }
  0x8f   : > { %v696_v6 = vpop.permute.xlu0 %695 }
  0x90   : > { %v702_v7 = vpack.c.bf16 %v699_v5, %v696_v6  ;;  %v941_v5 = vld [vmem:[%s2714_s6 + $0x4] sm:$0xf] }
  0x92   : > { %2096 = vmatmul.mubr.msk.bf16.vlgmr.msra.gmra.mrb[0].mxu1 %vm703_vm1, %v702_v7 }
 0x165   : > { %v2097_v8 = vpop.f32.mrb[0].mxu1 }
 0x166   : > { %v748_v9 = vpop.f32.mrb[1].mxu1 }
 0x167   : > { %v2098_v10 = vpop.f32.mrb[2].mxu1 }
 0x168   : > { %v2431_v11 = vpack.c.bf16 %v2098_v10, %v2097_v8  ;;  %v751_v12 = vpop.f32.mrb[3].mxu1  ;;  %v940_v10 = vld [vmem:[%s2714_s6] sm:$0xf] }
 0x169   : > { %v763_v13 = vpack.c.bf16 %v751_v12, %v748_v9  ;;  %v951_v9 = vsel %vm710_vm0, %v941_v5, 0  ;;  %v943_v12 = vld [vmem:[%s2714_s6 + $0xc] sm:$0xf] }
 0x16a   : > { %769 = vrot.lane.b32.xlu0 %v2431_v11, %s2283_s5 }
 0x16b   : > { %767 = vrot.lane.b32.xlu1 %v763_v13, %s2283_s5  ;;  %2103 = vmatprep.mubr.msk.bf16.mxu1 %vm703_vm1, %v763_v13 }
 0x1dc   : > { %v770_v16 = vpop.permute.xlu0 %769 }
 0x1dd   : > { %v768_v14 = vpop.permute.xlu1 %767  ;;  %v781_v17 = vsel %vm703_vm1, %v770_v16, 0 }
 0x1de   : > { %v778_v15 = vsel %vm703_vm1, %v768_v14, 0  ;;  %2212 = vmatprep.subr.msk.bf16.mxu1 %vm703_vm1, %v768_v14 }
 0x1df   : > { %2100 = vmatpush3.bf16.xpose.msra.mxu1 %v778_v15  ;;  %v942_v15 = vld [vmem:[%s2714_s6 + $0x8] sm:$0xf]  ;;  %s2719_s6 = smov 112  }
 0x1e0   : > { %2213 = vmatprep.subr.msk.bf16.mxu1 %vm703_vm1, %v770_v16 }
 0x1e7   : > { %2102 = vmatpush3.bf16.xpose.msra.mxu1 %v781_v17 }
 0x1e8   : > { %2121 = vmatprep.subr.bf16.mxu1 %v2286_v54 }
 0x1ee   : > { %2104 = vmatmul.mubr.msk.bf16.vlgmr.msra.gmra.mrb[4].mxu1 %vm703_vm1, %v2431_v11 }
 0x1ef   : > { %2123 = vmatprep.mubr.msk.bf16.mxu1 %vm2287_vm3, %v2286_v54 }
 0x2c1   : > { %v2105_v19 = vpop.f32.mrb[4].mxu1 }
 0x2c2   : > { %v817_v20 = vpop.f32.mrb[5].mxu1  ;;  %v826_v30 = vadd.f32 %v2105_v19, %v689_v25 }
 0x2c3   : > { %v818_v23 = vadd.f32 %v817_v20, %v687_v18  ;;  %v2106_v24 = vpop.f32.mrb[6].mxu1  ;;  %v1092_v18 = vsel %vm710_vm0, %v943_v12, 0 }
 0x2c4   : > { %v820_v26 = vpop.f32.mrb[7].mxu1  ;;  %v829_v27 = vadd.f32 %v2106_v24, %v690_v21  ;;  %v839_v33 = vsel %vm832_vm2, %v826_v30, -inf  ;;  %v1044_v21 = vsel %vm710_vm0, %v942_v15, 0 }
 0x2c5   : > { %v821_v28 = vadd.f32 %v820_v26, %v688_v22  ;;  %v833_v29 = vsel %vm832_vm2, %v818_v23, -inf }
 0x2c6   : > { %834 = vmax.xlane.f32.xlu1 %v833_v29  ;;  %v842_v32 = vsel %vm832_vm2, %v829_v27, -inf }
 0x2c7   : > { %v836_v31 = vsel %vm832_vm2, %v821_v28, -inf }
 0x2c8   : > { %837 = vmax.xlane.f32.xlu0 %v836_v31 }
 0x2ca   : > { %843 = vmax.xlane.f32.xlu1 %v842_v32 }
 0x2cc   : > { %840 = vmax.xlane.f32.xlu0 %v839_v33 }
 0x353   : > { %v835_v34 = vpop.xlane.xlu1 %834 }
 0x354   : > { %v845_v38 = vsub.f32 %v818_v23, %v835_v34 }
 0x355   : > { %v838_v35 = vpop.xlane.xlu0 %837 }
 0x356   : > { %v846_v36 = vsub.f32 %v821_v28, %v838_v35  ;;  %v849_v44 = vmul.f32 1.442695, %v845_v38 }
 0x357   : > { %v844_v37 = vpop.xlane.xlu1 %843 }
 0x358   : > { %v848_v39 = vsub.f32 %v829_v27, %v844_v37  ;;  %v851_v40 = vmul.f32 1.442695, %v846_v36 }
 0x359   : > { %v841_v41 = vpop.xlane.xlu0 %840 }
 0x35a   : > { %v855_v42 = vmul.f32 1.442695, %v848_v39  ;;  %v847_v43 = vsub.f32 %v826_v30, %v841_v41  ;;  %v2011_v41 = vld [vmem:[%s2715_s7] ss:$0 sm:$0xff] }
 0x35c   : > { %2237 = vpow2.f32 %v855_v42  ;;  %v853_v45 = vmul.f32 1.442695, %v847_v43 }
 0x35d   : > { %2239 = vpow2.f32 %v851_v40 }
 0x35e   : > { %2241 = vpow2.f32 %v853_v45 }
 0x35f   : > { %2243 = vpow2.f32 %v849_v44 }
 0x366   : > { %v2238_v46 = vpop.eup %2237 }
 0x367   : > { %v2240_v47 = vpop.eup %2239  ;;  %v866_v48 = vsel %vm832_vm2, %v2238_v46, 0.0 }
 0x368   : > { %v2242_v49 = vpop.eup %2241  ;;  %867 = vadd.xlane.f32.xlu1 %v866_v48  ;;  %v860_v52 = vsel %vm832_vm2, %v2240_v47, 0.0 }
 0x369   : > { %v863_v50 = vsel %vm832_vm2, %v2242_v49, 0.0  ;;  %v2244_v51 = vpop.eup %2243 }
 0x36a   : > { %864 = vadd.xlane.f32.xlu0 %v863_v50  ;;  %v857_v53 = vsel %vm832_vm2, %v2244_v51, 0.0 }
 0x36c   : > { %861 = vadd.xlane.f32.xlu1 %v860_v52 }
 0x36e   : > { %858 = vadd.xlane.f32.xlu0 %v857_v53 }
 0x37d   : > { %881 = vrot.lane.b32.xlu1 %v2431_v11, %s2701_s23  ;;  %v997_v11 = vsel %vm710_vm0, %v940_v10, 0 }
 0x37e   : > { %2122 = vmatpush3.bf16.msra.mxu1 %v997_v11 }
 0x37f   : > { %2133 = vmatprep.subr.bf16.mxu1 %v2286_v54 }
 0x384   : > { %879 = vrot.lane.b32.xlu0 %v763_v13, %s2701_s23 }
 0x3f5   : > { %v868_v55 = vpop.xlane.xlu1 %867 }
 0x3f7   : > { %v865_v56 = vpop.xlane.xlu0 %864 }
 0x3f8   : > { %2245 = vrcp.f32 %v865_v56 }
 0x3f9   : > { %v862_v57 = vpop.xlane.xlu1 %861 }
 0x3fa   : > { %2247 = vrcp.f32 %v862_v57 }
 0x3fb   : > { %2249 = vrcp.f32 %v868_v55  ;;  %v859_v58 = vpop.xlane.xlu0 %858 }
 0x3fc   : > { %2251 = vrcp.f32 %v859_v58 }
 0x3fd   : > { %v882_v60 = vpop.permute.xlu1 %881 }
 0x3ff   : > { %v880_v59 = vpop.permute.xlu0 %879 }
 0x400   : > { %2107 = vmatprep.subr.bf16.mxu0 %v880_v59 }
 0x401   : > { %2108 = vmatpush3.bf16.msra.mxu0 %v880_v59 }
 0x402   : > { %2109 = vmatprep.subr.bf16.mxu0 %v882_v60  ;;  %v2246_v61 = vpop.eup %2245 }
 0x403   : > { %v875_v1 = vmul.f32 %v2246_v61, %v2242_v49 }
 0x404   : > { %v2248_v62 = vpop.eup %2247 }
 0x405   : > { %v2250_v63 = vpop.eup %2249  ;;  %2110 = vmatpush3.bf16.msra.mxu0 %v882_v60  ;;  %v874_v4 = vmul.f32 %v2248_v62, %v2240_v47  ;;  %v685_v47 = vld [vmem:[%s675_s0] sm:$0xff]  ;;  %s678_s0 = scalar_lea.vmem %s2717_s29, %s2721_s25 }
 0x406   : > { %v2252_v0 = vpop.eup %2251  ;;  %2115 = vmatprep.subr.bf16.mxu0 %v2286_v54  ;;  %v876_v6 = vmul.f32 %v2250_v63, %v2238_v46 }
 0x407   : > { %v873_v3 = vmul.f32 %v2252_v0, %v2244_v51  ;;  %v2012_v0 = vld [vmem:[%s2685_s8] ss:$0 sm:$0xff] }
 0x408   : > { %v878_v8 = vpack.c.bf16 %v876_v6, %v875_v1 }
 0x409   : > { %v877_v7 = vpack.c.bf16 %v874_v4, %v873_v3  ;;  %v2013_v3 = vld [vmem:[%s2686_s9] ss:$0 sm:$0xff] }
 0x40b   : > { %2111 = vmatprep.mubr.msk.bf16.mxu0 %vm832_vm2, %v877_v7 }
 0x40c   : > { %2112 = vmatmul.mubr.msk.bf16.vlgmr.msra.gmra.mrb[0].mxu0 %vm832_vm2, %v878_v8 }
 0x40d   : > { %2116 = vmatpush3.bf16.msra.mxu0 %v951_v9  ;;  %2117 = vmatprep.mubr.msk.bf16.mxu0 %vm2287_vm3, %v2286_v54 }
 0x40e   : > { %2127 = vmatprep.subr.bf16.mxu0 %v2286_v54 }
 0x4df   : > { %v2113_v13 = vpop.f32.mrb[0].mxu0 }
 0x4e0   : > { %v925_v14 = vpop.f32.mrb[1].mxu0  ;;  %v1039_v23 = vpack.c.bf16 %v2113_v13, %v2113_v13 }
 0x4e1   : > { %v945_v16 = vpack.c.bf16 %v925_v14, %v925_v14  ;;  %v2114_v17 = vpop.f32.mrb[2].mxu0 }
 0x4e2   : > { %v928_v19 = vpop.f32.mrb[3].mxu0  ;;  %v1087_v22 = vpack.c.bf16 %v2114_v17, %v2114_v17 }
 0x4e3   : > { %v946_v20 = vpack.c.bf16 %v928_v19, %v928_v19  ;;  %2124 = vmatmul.mubr.msk.bf16.vlgmr.msra.gmra.mrb[8].mxu1 %vm703_vm1, %v945_v16 }
 0x4e4   : > { %2134 = vmatpush3.bf16.msra.mxu1 %v1092_v18  ;;  %2135 = vmatprep.mubr.msk.bf16.mxu1 %vm2287_vm3, %v2286_v54 }
 0x4e5   : > { %2118 = vmatmul.mubr.msk.bf16.vlgmr.msra.gmra.mrb[4].mxu0 %vm703_vm1, %v946_v20 }
 0x4e6   : > { %2128 = vmatpush3.bf16.msra.mxu0 %v1044_v21  ;;  %2129 = vmatprep.mubr.msk.bf16.mxu0 %vm2287_vm3, %v2286_v54 }
 0x4eb   : > { %2136 = vmatmul.mubr.msk.bf16.vlgmr.msra.gmra.mrb[12].mxu1 %vm703_vm1, %v1087_v22 }
 0x4ed   : > { %2130 = vmatmul.mubr.msk.bf16.vlgmr.msra.gmra.mrb[8].mxu0 %vm703_vm1, %v1039_v23 }
 0x5b6   : > { %v1033_v24 = vpop.f32.mrb[8].mxu1 }
 0x5b7   : > { %v2125_v25 = vpop.f32.mrb[9].mxu1 }
 0x5b8   : > { %v987_v26 = vpop.f32.mrb[4].mxu0  ;;  %v1036_v27 = vpop.f32.mrb[10].mxu1 }
 0x5b9   : > { %v1034_v28 = vadd.f32 %v1033_v24, %v987_v26  ;;  %v2119_v29 = vpop.f32.mrb[5].mxu0  ;;  %v2126_v30 = vpop.f32.mrb[11].mxu1  ;;  %v2014_v27 = vld [vmem:[%s678_s0] ss:$0 sm:$0xff] }
 0x5ba   : > { %v990_v31 = vpop.f32.mrb[6].mxu0  ;;  %v1176_v29 = vld [vmem:[%s2718_s1 + $0x18] sm:$0xff]  ;;  %v1174_v30 = vld [vmem:[%s2718_s1 + $0x8] sm:$0xff] }
 0x5bb   : > { %v2120_v32 = vpop.f32.mrb[7].mxu0 }
 0x5bc   : > { %v1175_v32 = vld [vmem:[%s2718_s1 + $0x10] sm:$0xff] }
 0x5be   : > { %v1128_v33 = vpop.f32.mrb[12].mxu1 }
 0x5bf   : > { %v2137_v34 = vpop.f32.mrb[13].mxu1 }
 0x5c0   : > { %v1080_v35 = vpop.f32.mrb[8].mxu0  ;;  %v1131_v36 = vpop.f32.mrb[14].mxu1  ;;  %v1187_v34 = vadd.f32 %v2014_v27, %v1176_v29  ;;  %v1506_v29 = vld [vmem:[%s2688_s11 + $0x8] sm:$0xf] }
 0x5c1   : > { %v1086_v37 = vadd.f32 %v1080_v35, %v1034_v28  ;;  %v2131_v38 = vpop.f32.mrb[9].mxu0  ;;  %v2138_v39 = vpop.f32.mrb[15].mxu1  ;;  %v1173_v28 = vld [vmem:[%s2718_s1] sm:$0xff]  ;;  %v1185_v35 = vadd.f32 %v2014_v27, %v1174_v30 }
 0x5c2   : > { %v1083_v40 = vpop.f32.mrb[10].mxu0  ;;  %v1184_v31 = vadd.f32 %v2014_v27, %v1173_v28 }
 0x5c3   : > { %v1134_v42 = vadd.f32 %v1128_v33, %v1086_v37  ;;  %v2132_v43 = vpop.f32.mrb[11].mxu0  ;;  %v1186_v37 = vadd.f32 %v2014_v27, %v1175_v32 }
 0x5c5   : > { %v1141_v44 = vadd.f32 %v2011_v41, %v1134_v42 }
 0x5c7   : > { %v1142_v45 = vadd.f32 %v1141_v44, %v2420_v2  ;;  %v1188_v2 = vld [vmem:[%s2687_s10] sm:$0xf] }
 0x5c8   : > { %2215 = vmatprep.subr.msk.bf16.mxu1 %vm710_vm0, %v1188_v2  ;;  %v1208_v53 = vsel %vm710_vm0, %v1188_v2, 0  ;;  %2214 = vmatprep.subr.msk.bf16.mxu0 %vm710_vm0, %v1188_v2 }
 0x5c9   : > { %v1145_v46 = vsel %vm832_vm2, %v1142_v45, 0.0  ;;  %2146 = vmatpush3.bf16.msra.mxu1 %v1208_v53  ;;  %2140 = vmatpush3.bf16.msra.mxu0 %v1208_v53 }
 0x5ca   : > { %1146 = vadd.xlane.f32.xlu1 %v1145_v46 }
 0x5db   : > { %1263 = vrot.lane.b32.xlu1 %v685_v47, %s2701_s23 }
 0x5df   : > { %1266 = vrot.lane.b32.xlu1 %v685_v47, %s2284_s22 }
 0x657   : > { %v1147_v48 = vpop.xlane.xlu1 %1146 }
 0x658   : > { %v1149_v49 = vmul.f32 0.03125, %v1147_v48 }
 0x65a   : > { %v1150_v50 = vsub.f32 %v1142_v45, %v1149_v49 }
 0x65b   : > { %v1264_v55 = vpop.permute.xlu1 %1263 }
 0x65c   : > { %v1151_v51 = vmul.f32 %v1150_v50, %v1150_v50 }
 0x65e   : > { %v1152_v52 = vsel %vm832_vm2, %v1151_v51, 0.0 }
 0x65f   : > { %1153 = vadd.xlane.f32.xlu0 %v1152_v52  ;;  %v1267_v58 = vpop.permute.xlu1 %1266 }
 0x660   : > { %v1270_v61 = vpack.c.bf16 %v1267_v58, %v1264_v55 }
 0x675   : > { %1260 = vrot.lane.b32.xlu0 %v685_v47, %s2283_s5 }
 0x6ec   : > { %v1154_v56 = vpop.xlane.xlu0 %1153 }
 0x6ed   : > { %v1155_v57 = vmul.f32 0.03125, %v1154_v56 }
 0x6ef   : > { %v1156_v59 = vadd.f32 1e-05, %v1155_v57 }
 0x6f0   : > { %v1261_v60 = vpop.permute.xlu0 %1260 }
 0x6f1   : > { %2253 = vrsqrt.f32 %v1156_v59  ;;  %v1269_v62 = vpack.c.bf16 %v1261_v60, %v685_v47 }
 0x6f3   : > { %2147 = vmatprep.mubr.msk.bf16.mxu1 %vm703_vm1, %v1269_v62 }
 0x6f4   : > { %2148 = vmatmul.mubr.msk.bf16.vlgmr.msra.gmra.mrb[16].mxu1 %vm703_vm1, %v1270_v61 }
 0x6fb   : > { %v2254_v63 = vpop.eup %2253 }
 0x6fc   : > { %v1158_v1 = vmul.f32 %v2254_v63, %v1150_v50 }
 0x6fe   : > { %v1165_v4 = vmul.f32 %v2012_v0, %v1158_v1 }
 0x700   : > { %v2527_v5 = vadd.f32 %v2013_v3, %v1165_v4 }
 0x702   : > { %1193 = vrot.lane.b32.xlu1 %v2527_v5, %s2701_s23  ;;  %1190 = vrot.lane.b32.xlu0 %v2527_v5, %s2283_s5 }
 0x706   : > { %1196 = vrot.lane.b32.xlu0 %v2527_v5, %s2284_s22 }
 0x774   : > { %v1191_v6 = vpop.permute.xlu0 %1190  ;;  %v1194_v8 = vpop.permute.xlu1 %1193 }
 0x775   : > { %v1199_v7 = vpack.c.bf16 %v1191_v6, %v2527_v5 }
 0x777   : > { %2141 = vmatprep.mubr.msk.bf16.mxu0 %vm703_vm1, %v1199_v7 }
 0x778   : > { %v1197_v9 = vpop.permute.xlu0 %1196 }
 0x779   : > { %v1200_v10 = vpack.c.bf16 %v1197_v9, %v1194_v8 }
 0x77b   : > { %2142 = vmatmul.mubr.msk.bf16.vlgmr.msra.gmra.mrb[12].mxu0 %vm703_vm1, %v1200_v10 }
 0x7c7   : > { %v2149_v11 = vpop.f32.mrb[16].mxu1 }
 0x7c8   : > { %v1311_v12 = vpop.f32.mrb[17].mxu1 }
 0x7c9   : > { %v2150_v13 = vpop.f32.mrb[18].mxu1 }
 0x7ca   : > { %v2538_v14 = vpack.c.bf16 %v2150_v13, %v2149_v11  ;;  %v1314_v15 = vpop.f32.mrb[19].mxu1 }
 0x7cb   : > { %v2540_v16 = vpack.c.bf16 %v1314_v15, %v1311_v12 }
 0x7cc   : > { %1334 = vrot.lane.b32.xlu0 %v2538_v14, %s2283_s5 }
 0x7cd   : > { %1332 = vrot.lane.b32.xlu1 %v2540_v16, %s2283_s5 }
 0x83e   : > { %v1335_v19 = vpop.permute.xlu0 %1334 }
 0x83f   : > { %v1333_v17 = vpop.permute.xlu1 %1332  ;;  %v1346_v20 = vsel %vm703_vm1, %v1335_v19, 0 }
 0x840   : > { %v1343_v18 = vsel %vm703_vm1, %v1333_v17, 0  ;;  %2216 = vmatprep.subr.msk.bf16.mxu0 %vm703_vm1, %v1333_v17 }
 0x841   : > { %2152 = vmatpush3.bf16.xpose.msra.mxu0 %v1343_v18 }
 0x842   : > { %2217 = vmatprep.subr.msk.bf16.mxu0 %vm703_vm1, %v1335_v19  ;;  %v1505_v19 = vld [vmem:[%s2688_s11 + $0x4] sm:$0xf] }
 0x849   : > { %2154 = vmatpush3.bf16.xpose.msra.mxu0 %v1346_v20 }
 0x84a   : > { %2173 = vmatprep.subr.bf16.mxu0 %v2286_v54 }
 0x84e   : > { %v2143_v21 = vpop.f32.mrb[12].mxu0 }
 0x84f   : > { %v1244_v22 = vpop.f32.mrb[13].mxu0 }
 0x850   : > { %v2144_v23 = vpop.f32.mrb[14].mxu0 }
 0x851   : > { %v1327_v24 = vpack.c.bf16 %v2144_v23, %v2143_v21  ;;  %v1247_v25 = vpop.f32.mrb[15].mxu0  ;;  %v1515_v23 = vsel %vm710_vm0, %v1505_v19, 0  ;;  %v2030_v19 = vld [vmem:[%s2693_s16] ss:$0 sm:$0xff] }
 0x852   : > { %v1326_v26 = vpack.c.bf16 %v1247_v25, %v1244_v22 }
 0x854   : > { %2155 = vmatprep.mubr.msk.bf16.mxu0 %vm703_vm1, %v1326_v26  ;;  %v1507_v26 = vld [vmem:[%s2688_s11 + $0xc] sm:$0xf] }
 0x855   : > { %2156 = vmatmul.mubr.msk.bf16.vlgmr.msra.gmra.mrb[16].mxu0 %vm703_vm1, %v1327_v24  ;;  %v1504_v24 = vld [vmem:[%s2688_s11] sm:$0xf]  ;;  %v1656_v32 = vsel %vm710_vm0, %v1507_v26, 0 }
 0x856   : > { %2175 = vmatprep.mubr.msk.bf16.mxu0 %vm2287_vm3, %v2286_v54  ;;  %v1561_v25 = vsel %vm710_vm0, %v1504_v24, 0 }
 0x857   : > { %2174 = vmatpush3.bf16.msra.mxu0 %v1561_v25 }
 0x858   : > { %2185 = vmatprep.subr.bf16.mxu0 %v2286_v54 }
 0x928   : > { %v2157_v33 = vpop.f32.mrb[16].mxu0 }
 0x929   : > { %v1382_v36 = vpop.f32.mrb[17].mxu0  ;;  %v1391_v44 = vadd.f32 %v2157_v33, %v1186_v37 }
 0x92a   : > { %v1383_v38 = vadd.f32 %v1382_v36, %v1184_v31  ;;  %v2158_v39 = vpop.f32.mrb[18].mxu0 }
 0x92b   : > { %v1385_v40 = vpop.f32.mrb[19].mxu0  ;;  %v1394_v41 = vadd.f32 %v2158_v39, %v1187_v34  ;;  %v1403_v47 = vsel %vm832_vm2, %v1391_v44, -inf }
 0x92c   : > { %v1386_v42 = vadd.f32 %v1385_v40, %v1185_v35  ;;  %v1397_v43 = vsel %vm832_vm2, %v1383_v38, -inf  ;;  %v1608_v35 = vsel %vm710_vm0, %v1506_v29, 0 }
 0x92d   : > { %1398 = vmax.xlane.f32.xlu1 %v1397_v43  ;;  %v1406_v46 = vsel %vm832_vm2, %v1394_v41, -inf }
 0x92e   : > { %v1400_v45 = vsel %vm832_vm2, %v1386_v42, -inf }
 0x92f   : > { %1401 = vmax.xlane.f32.xlu0 %v1400_v45 }
 0x931   : > { %1407 = vmax.xlane.f32.xlu1 %v1406_v46 }
 0x933   : > { %1404 = vmax.xlane.f32.xlu0 %v1403_v47 }
 0x9ba   : > { %v1399_v48 = vpop.xlane.xlu1 %1398 }
 0x9bb   : > { %v1409_v52 = vsub.f32 %v1383_v38, %v1399_v48 }
 0x9bc   : > { %v1402_v49 = vpop.xlane.xlu0 %1401 }
 0x9bd   : > { %v1410_v50 = vsub.f32 %v1386_v42, %v1402_v49  ;;  %v1413_v58 = vmul.f32 1.442695, %v1409_v52 }
 0x9be   : > { %v1408_v51 = vpop.xlane.xlu1 %1407 }
 0x9bf   : > { %v1412_v2 = vsub.f32 %v1394_v41, %v1408_v51  ;;  %v1415_v53 = vmul.f32 1.442695, %v1410_v50 }
 0x9c0   : > { %v1405_v55 = vpop.xlane.xlu0 %1404 }
 0x9c1   : > { %v1419_v56 = vmul.f32 1.442695, %v1412_v2  ;;  %v1411_v57 = vsub.f32 %v1391_v44, %v1405_v55  ;;  %v2027_v55 = vld [vmem:[%s2689_s12] ss:$0 sm:$0xff] }
 0x9c3   : > { %2255 = vpow2.f32 %v1419_v56  ;;  %v1417_v59 = vmul.f32 1.442695, %v1411_v57 }
 0x9c4   : > { %2257 = vpow2.f32 %v1415_v53 }
 0x9c5   : > { %2259 = vpow2.f32 %v1417_v59 }
 0x9c6   : > { %2261 = vpow2.f32 %v1413_v58 }
 0x9cd   : > { %v2256_v60 = vpop.eup %2255 }
 0x9ce   : > { %v2258_v61 = vpop.eup %2257  ;;  %v1430_v62 = vsel %vm832_vm2, %v2256_v60, 0.0 }
 0x9cf   : > { %v2260_v63 = vpop.eup %2259  ;;  %1431 = vadd.xlane.f32.xlu1 %v1430_v62  ;;  %v1424_v3 = vsel %vm832_vm2, %v2258_v61, 0.0 }
 0x9d0   : > { %v1427_v0 = vsel %vm832_vm2, %v2260_v63, 0.0  ;;  %v2262_v1 = vpop.eup %2261 }
 0x9d1   : > { %1428 = vadd.xlane.f32.xlu0 %v1427_v0  ;;  %v1421_v4 = vsel %vm832_vm2, %v2262_v1, 0.0 }
 0x9d3   : > { %1425 = vadd.xlane.f32.xlu1 %v1424_v3  ;;  %v2231_v3 = vld [vmem:[%s2692_s15] sm:$0xff]  }
 0x9d5   : > { %1422 = vadd.xlane.f32.xlu0 %v1421_v4  ;;  %v2233_v4 = vld [vmem:[%s2694_s17] sm:$0xff]  }
 0x9e4   : > { %1445 = vrot.lane.b32.xlu1 %v2538_v14, %s2719_s6 }
 0x9eb   : > { %1443 = vrot.lane.b32.xlu0 %v2540_v16, %s2719_s6 }
 0xa5c   : > { %v1432_v6 = vpop.xlane.xlu1 %1431 }
 0xa5e   : > { %v1429_v7 = vpop.xlane.xlu0 %1428 }
 0xa5f   : > { %2263 = vrcp.f32 %v1429_v7 }
 0xa60   : > { %v1426_v8 = vpop.xlane.xlu1 %1425 }
 0xa61   : > { %2265 = vrcp.f32 %v1426_v8 }
 0xa62   : > { %2267 = vrcp.f32 %v1432_v6  ;;  %v1423_v9 = vpop.xlane.xlu0 %1422  ;;  %v2234_v6 = vld [vmem:[%s2694_s17 + $0x8] sm:$0xff]  }
 0xa63   : > { %2269 = vrcp.f32 %v1423_v9 }
 0xa64   : > { %v1446_v11 = vpop.permute.xlu1 %1445 }
 0xa66   : > { %v1444_v10 = vpop.permute.xlu0 %1443 }
 0xa67   : > { %2159 = vmatprep.subr.bf16.mxu1 %v1444_v10 }
 0xa68   : > { %2160 = vmatpush3.bf16.msra.mxu1 %v1444_v10 }
 0xa69   : > { %2161 = vmatprep.subr.bf16.mxu1 %v1446_v11  ;;  %v2264_v12 = vpop.eup %2263 }
 0xa6a   : > { %v1439_v17 = vmul.f32 %v2264_v12, %v2260_v63 }
 0xa6b   : > { %v2266_v13 = vpop.eup %2265 }
 0xa6c   : > { %v2268_v15 = vpop.eup %2267  ;;  %2162 = vmatpush3.bf16.msra.mxu1 %v1446_v11  ;;  %v1438_v18 = vmul.f32 %v2266_v13, %v2258_v61  ;;  %v2028_v11 = vld [vmem:[%s2690_s13] ss:$0 sm:$0xff] }
 0xa6d   : > { %v2270_v14 = vpop.eup %2269  ;;  %2167 = vmatprep.subr.bf16.mxu1 %v2286_v54  ;;  %v1440_v20 = vmul.f32 %v2268_v15, %v2256_v60  ;;  %v2029_v13 = vld [vmem:[%s2691_s14] ss:$0 sm:$0xff] }
 0xa6e   : > { %v1437_v16 = vmul.f32 %v2270_v14, %v2262_v1 }
 0xa6f   : > { %v1442_v22 = vpack.c.bf16 %v1440_v20, %v1439_v17 }
 0xa70   : > { %v1441_v21 = vpack.c.bf16 %v1438_v18, %v1437_v16  ;;  %v2235_v16 = vld [vmem:[%s2694_s17 + $0x10] sm:$0xff]   ;;  %v2236_v18 = vld [vmem:[%s2694_s17 + $0x18] sm:$0xff]  }
 0xa72   : > { %2163 = vmatprep.mubr.msk.bf16.mxu1 %vm832_vm2, %v1441_v21 }
 0xa73   : > { %2164 = vmatmul.mubr.msk.bf16.vlgmr.msra.gmra.mrb[20].mxu1 %vm832_vm2, %v1442_v22 }
 0xa74   : > { %2168 = vmatpush3.bf16.msra.mxu1 %v1515_v23  ;;  %2169 = vmatprep.mubr.msk.bf16.mxu1 %vm2287_vm3, %v2286_v54 }
 0xa75   : > { %2179 = vmatprep.subr.bf16.mxu1 %v2286_v54 }
 0xb46   : > { %v2165_v27 = vpop.f32.mrb[20].mxu1 }
 0xb47   : > { %v1489_v28 = vpop.f32.mrb[21].mxu1  ;;  %v1603_v37 = vpack.c.bf16 %v2165_v27, %v2165_v27 }
 0xb48   : > { %v1509_v30 = vpack.c.bf16 %v1489_v28, %v1489_v28  ;;  %v2166_v31 = vpop.f32.mrb[22].mxu1 }
 0xb49   : > { %v1492_v33 = vpop.f32.mrb[23].mxu1  ;;  %v1651_v36 = vpack.c.bf16 %v2166_v31, %v2166_v31 }
 0xb4a   : > { %v1510_v34 = vpack.c.bf16 %v1492_v33, %v1492_v33  ;;  %2176 = vmatmul.mubr.msk.bf16.vlgmr.msra.gmra.mrb[20].mxu0 %vm703_vm1, %v1509_v30 }
 0xb4b   : > { %2186 = vmatpush3.bf16.msra.mxu0 %v1656_v32  ;;  %2187 = vmatprep.mubr.msk.bf16.mxu0 %vm2287_vm3, %v2286_v54 }
 0xb4c   : > { %2170 = vmatmul.mubr.msk.bf16.vlgmr.msra.gmra.mrb[24].mxu1 %vm703_vm1, %v1510_v34  ;;  %2199 = vmatprep.subr.bf16.mxu0 %v2286_v54 }
 0xb4d   : > { %2180 = vmatpush3.bf16.msra.mxu1 %v1608_v35  ;;  %2181 = vmatprep.mubr.msk.bf16.mxu1 %vm2287_vm3, %v2286_v54 }
 0xb4e   : > { %2191 = vmatprep.subr.bf16.mxu1 %v2286_v54 }
 0xb52   : > { %2188 = vmatmul.mubr.msk.bf16.vlgmr.msra.gmra.mrb[24].mxu0 %vm703_vm1, %v1651_v36 }
 0xb53   : > { %2207 = vmatprep.mubr.msk.bf16.mxu0 %vm2287_vm3, %v2286_v54  ;;  %2200 = vmatpush3.bf16.msra.mxu0 %v2233_v4 }
 0xb54   : > { %2182 = vmatmul.mubr.msk.bf16.vlgmr.msra.gmra.mrb[28].mxu1 %vm703_vm1, %v1603_v37  ;;  %2201 = vmatprep.subr.bf16.mxu0 %v2286_v54 }
 0xb55   : > { %2195 = vmatprep.mubr.msk.bf16.mxu1 %vm2287_vm3, %v2286_v54  ;;  %2192 = vmatpush3.bf16.msra.mxu1 %v2231_v3 }
 0xb56   : > { %2193 = vmatprep.subr.bf16.mxu1 %v2286_v54 }
 0xb57   : > { %2202 = vmatpush3.bf16.msra.mxu0 %v2234_v6 }
 0xb58   : > { %2203 = vmatprep.subr.bf16.mxu0 %v2286_v54 }
 0xb5b   : > { %2204 = vmatpush3.bf16.msra.mxu0 %v2235_v16 }
 0xb5c   : > { %2205 = vmatprep.subr.bf16.mxu0 %v2286_v54  ;;  %v2034_v54 = vld [vmem:[%s2695_s18] ss:$0 sm:$0xff] }
 0xb5f   : > { %2206 = vmatpush3.bf16.msra.mxu0 %v2236_v18 }
 0xc1d   : > { %v1597_v38 = vpop.f32.mrb[20].mxu0 }
 0xc1e   : > { %v2177_v39 = vpop.f32.mrb[21].mxu0 }
 0xc1f   : > { %v1551_v40 = vpop.f32.mrb[24].mxu1  ;;  %v1600_v41 = vpop.f32.mrb[22].mxu0 }
 0xc20   : > { %v1598_v42 = vadd.f32 %v1597_v38, %v1551_v40  ;;  %v2171_v43 = vpop.f32.mrb[25].mxu1  ;;  %v2178_v44 = vpop.f32.mrb[23].mxu0 }
 0xc21   : > { %v1554_v45 = vpop.f32.mrb[26].mxu1  ;;  %v2040_v43 = vld [vmem:[%s2696_s19] ss:$0 sm:$0xff] }
 0xc22   : > { %v2172_v46 = vpop.f32.mrb[27].mxu1  ;;  %v2041_v45 = vld [vmem:[%s2697_s20] ss:$0 sm:$0xff] }
 0xc25   : > { %v1692_v47 = vpop.f32.mrb[24].mxu0 }
 0xc26   : > { %v2189_v48 = vpop.f32.mrb[25].mxu0 }
 0xc27   : > { %v1644_v49 = vpop.f32.mrb[28].mxu1  ;;  %v1695_v50 = vpop.f32.mrb[26].mxu0 }
 0xc28   : > { %v1650_v51 = vadd.f32 %v1644_v49, %v1598_v42  ;;  %v2183_v52 = vpop.f32.mrb[29].mxu1  ;;  %v2190_v2 = vpop.f32.mrb[27].mxu0 }
 0xc29   : > { %v1647_v53 = vpop.f32.mrb[30].mxu1 }
 0xc2a   : > { %v1698_v56 = vadd.f32 %v1692_v47, %v1650_v51  ;;  %v2184_v57 = vpop.f32.mrb[31].mxu1 }
 0xc2c   : > { %v1705_v58 = vadd.f32 %v2027_v55, %v1698_v56 }
 0xc2e   : > { %v1706_v59 = vadd.f32 %v1705_v58, %v2527_v5  ;;  %v2232_v5 = vld [vmem:[%s2692_s15 + $0x8] sm:$0xff]  }
 0xc2f   : > { %2194 = vmatpush3.bf16.msra.mxu1 %v2232_v5 }
 0xc30   : > { %v1709_v60 = vsel %vm832_vm2, %v1706_v59, 0.0 }
 0xc31   : > { %1710 = vadd.xlane.f32.xlu1 %v1709_v60 }
 0xcbe   : > { %v1711_v61 = vpop.xlane.xlu1 %1710 }
 0xcbf   : > { %v1712_v62 = vmul.f32 0.03125, %v1711_v61 }
 0xcc1   : > { %v1713_v63 = vsub.f32 %v1706_v59, %v1712_v62 }
 0xcc3   : > { %v1714_v0 = vmul.f32 %v1713_v63, %v1713_v63 }
 0xcc5   : > { %v1715_v1 = vsel %vm832_vm2, %v1714_v0, 0.0 }
 0xcc6   : > { %1716 = vadd.xlane.f32.xlu0 %v1715_v1 }
 0xd53   : > { %v1717_v7 = vpop.xlane.xlu0 %1716 }
 0xd54   : > { %v1718_v8 = vmul.f32 0.03125, %v1717_v7 }
 0xd56   : > { %v1719_v9 = vadd.f32 1e-05, %v1718_v8 }
 0xd58   : > { %2271 = vrsqrt.f32 %v1719_v9 }
 0xd62   : > { %v2272_v10 = vpop.eup %2271 }
 0xd63   : > { %v1721_v12 = vmul.f32 %v2272_v10, %v1713_v63 }
 0xd65   : > { %v1728_v15 = vmul.f32 %v2028_v11, %v1721_v12 }
 0xd67   : > { %v1735_v14 = vadd.f32 %v2029_v13, %v1728_v15 }
 0xd69   : > { %v1750_v17 = vpack.c.bf16 %v1735_v14, %v1735_v14 }
 0xd6b   : > { %2196 = vmatmul.mubr.msk.bf16.vlgmr.msra.gmra.mrb[32].mxu1 %vm832_vm2, %v1750_v17 }
 0xe3e   : > { %v1806_v20 = vpop.f32.mrb[32].mxu1 }
 0xe3f   : > { %v1807_v21 = vadd.f32 %v2030_v19, %v1806_v20  ;;  %v2197_v22 = vpop.f32.mrb[33].mxu1 }
 0xe40   : > { %v1809_v23 = vpop.f32.mrb[34].mxu1 }
 0xe41   : > { %v1812_v24 = vmax.f32 %v1807_v21, 0.0  ;;  %v2198_v25 = vpop.f32.mrb[35].mxu1 }
 0xe43   : > { %v1813_v26 = vpack.c.bf16 %v1812_v24, %v1812_v24 }
 0xe45   : > { %2208 = vmatmul.mubr.msk.bf16.vlgmr.msra.gmra.mrb[28].mxu0 %vm1844_vm4, %v1813_v26 }
 0xf18   : > { %v1882_v27 = vpop.f32.mrb[28].mxu0 }
 0xf19   : > { %v1883_v28 = vadd.f32 %v2034_v54, %v1882_v27  ;;  %v2209_v29 = vpop.f32.mrb[29].mxu0 }
 0xf1a   : > { %v1885_v30 = vpop.f32.mrb[30].mxu0 }
 0xf1b   : > { %v2210_v31 = vpop.f32.mrb[31].mxu0  ;;  %v1888_v32 = vadd.f32 %v1883_v28, %v1735_v14 }
 0xf1d   : > { %v1891_v33 = vsel %vm832_vm2, %v1888_v32, 0.0 }
 0xf1e   : > { %1892 = vadd.xlane.f32.xlu0 %v1891_v33 }
 0xfab   : > { %v1893_v34 = vpop.xlane.xlu0 %1892 }
 0xfac   : > { %v1894_v35 = vmul.f32 0.03125, %v1893_v34 }
 0xfae   : > { %v1895_v36 = vsub.f32 %v1888_v32, %v1894_v35 }
 0xfb0   : > { %v1896_v37 = vmul.f32 %v1895_v36, %v1895_v36 }
 0xfb2   : > { %v1897_v38 = vsel %vm832_vm2, %v1896_v37, 0.0 }
 0xfb3   : > { %1898 = vadd.xlane.f32.xlu1 %v1897_v38 }
0x1040   : > { %v1899_v39 = vpop.xlane.xlu1 %1898 }
0x1041   : > { %v1900_v40 = vmul.f32 0.03125, %v1899_v39 }
0x1043   : > { %v1901_v41 = vadd.f32 1e-05, %v1900_v40 }
0x1045   : > { %2273 = vrsqrt.f32 %v1901_v41 }
0x104f   : > { %v2274_v42 = vpop.eup %2273 }
0x1050   : > { %v1903_v44 = vmul.f32 %v2274_v42, %v1895_v36 }
0x1052   : > { %v1910_v46 = vmul.f32 %v2040_v43, %v1903_v44 }
0x1054   : > { %v1917_v47 = vadd.f32 %v2041_v45, %v1910_v46 }
0x1056   : > { %1918 = vst.msk [vmem:[%s682_s27] sm:$0xff] %vm832_vm2, %v1917_v47 }
0x1057 PF: > { %s31_s2 = sadd.s32 1, %s2281_s2  }
0x1058   : > { %p28_p4 = scmp.ge.s32.totalorder %s31_s2, 4  }
0x105a   :  { %30 = sbr.rel (!%p28_p4) target bundleno = 9 (0x9), region = 140 }

</bundles_post_ra>
